<compile_context>
chip_gen: v7x
topology: tpu7x:2x2x1
jax: 0.10.0
libtpu: 0.0.40
codegen_flags: <defaults>
</compile_context>

<pallas_src>
import jax
import jax.numpy as jnp
from jax.experimental import pallas as pl
from jax.experimental.pallas import tpu as pltpu

D_IN = 768
D_HID = 512
TB_MAX = 1024  # max batch rows per grid step (1024x768 bf16 = 1.5 MiB / buffer)


def _round_up(x: int, m: int) -> int:
    return ((x + m - 1) // m) * m


def _pick_batch_tile(batch: int, tb_max: int = TB_MAX) -> int:
    """Rows per grid step.

    * batch <= 256: single tile equal to the full batch (always a legal block).
    * batch  > 256: >= 2 tiles (keeps both v7x TensorCores busy via the
      "parallel" grid axis), each a multiple of 256 (MXU width), <= tb_max.
    """
    if batch <= 256:
        return batch
    n_tiles = max(2, pl.cdiv(batch, tb_max))
    return min(tb_max, _round_up(pl.cdiv(batch, n_tiles), 256))


def _critic_kernel(x_ref, w1_ref, b1_ref, w2_ref, b2_ref, o_ref):
    # x_ref:  (TB, 768)  compute dtype     w1_ref: (768, 512) compute dtype
    # b1_ref: (1, 512)   f32               w2_ref: (512, 1)   f32
    # b2_ref: (1,)       f32 in SMEM       o_ref:  (TB, 1)    f32
    # Layer 1 on the MXU, f32 accumulation.
    h = jnp.dot(x_ref[...], w1_ref[...], preferred_element_type=jnp.float32)
    h = jnp.maximum(h + b1_ref[...], 0.0)  # bias + ReLU on the VPU
    # Dropout: identity (eval/inference mode).
    # Layer 2: standard orientation (TB,512) @ (512,1) -> (TB,1); no transpose.
    v = jnp.dot(h, w2_ref[...], preferred_element_type=jnp.float32)
    o_ref[...] = v + b2_ref[0]  # scalar bias from SMEM


def critic_forward(state, w1, b1, w2, b2, *, compute_dtype=None):
    """state: [B, 768] -> value: [B] (squeezed, like the PyTorch module).

    Weights are stored as [in_features, out_features], so the kernel computes
    x @ W + b (== PyTorch's x @ W.T + b with W of shape [out, in]).

    compute_dtype=jnp.bfloat16 halves the x HBM traffic and uses the fast MXU
    path (strongly recommended on v5e); default keeps the module's f32 math.
    """
    B, d_in = state.shape
    d_hid = w1.shape[-1]
    if compute_dtype is None:
        compute_dtype = state.dtype  # f32 default == PyTorch-parity (slow path on v5e)

    # Pre-cast OUTSIDE the kernel: the grid-loop body never re-converts, and
    # the batch-tile DMA streams the narrow dtype from HBM.
    x = state.astype(compute_dtype)
    w1_c = jnp.asarray(w1, compute_dtype).reshape(d_in, d_hid)
    b1_2d = jnp.asarray(b1, jnp.float32).reshape(1, d_hid)
    w2_col = jnp.asarray(w2, jnp.float32).reshape(d_hid, 1)
    b2_1d = jnp.asarray(b2, jnp.float32).reshape(1)

    tb = _pick_batch_tile(B)
    n_tiles = pl.cdiv(B, tb)  # last block may be partial; Pallas masks it

    flops = 2 * B * d_in * d_hid + 2 * B * d_hid
    bytes_accessed = (B * d_in * x.dtype.itemsize            # stream x
                      + d_in * d_hid * w1_c.dtype.itemsize   # resident W1
                      + (d_hid + d_hid + 1) * 4              # b1, w2, b2
                      + B * 4)                                # output

    out = pl.pallas_call(
        _critic_kernel,
        out_shape=jax.ShapeDtypeStruct((B, 1), jnp.float32),
        grid_spec=pltpu.PrefetchScalarGridSpec(
            num_scalar_prefetch=0,
            grid=(n_tiles,),
            in_specs=[
                pl.BlockSpec((tb, d_in), lambda i: (i, 0)),          # x batch tile
                pl.BlockSpec((d_in, d_hid), lambda i: (0, 0)),       # W1 (resident)
                pl.BlockSpec((1, d_hid), lambda i: (0, 0)),          # b1
                pl.BlockSpec((d_hid, 1), lambda i: (0, 0)),          # w2 column
                pl.BlockSpec(memory_space=pltpu.MemorySpace.SMEM),   # b2 scalar
            ],
            out_specs=pl.BlockSpec((tb, 1), lambda i: (i, 0)),
        ),
        compiler_params=pltpu.CompilerParams(
            dimension_semantics=("parallel",),
        ),
        cost_estimate=pl.CostEstimate(
            flops=flops, transcendentals=0, bytes_accessed=bytes_accessed),
    )(x, w1_c, b1_2d, w2_col, b2_1d)

    # torch .squeeze(): drops the batch dim too if B == 1.
    return jnp.squeeze(out)


def init_params(key):
    """Deterministic synthetic parameters (Kaiming-ish uniform like PyTorch)."""
    k1, k2, k3, k4 = jax.random.split(key, 4)
    lim1 = 1.0 / jnp.sqrt(jnp.float32(D_IN))
    lim2 = 1.0 / jnp.sqrt(jnp.float32(D_HID))
    w1 = jax.random.uniform(k1, (D_IN, D_HID), jnp.float32, -lim1, lim1)
    b1 = jax.random.uniform(k2, (D_HID,), jnp.float32, -lim1, lim1)
    w2 = jax.random.uniform(k3, (D_HID, 1), jnp.float32, -lim2, lim2)
    b2 = jax.random.uniform(k4, (1,), jnp.float32, -lim2, lim2)
    return w1, b1, w2, b2


if __name__ == "__main__":
    key = jax.random.PRNGKey(0)
    k_params, k_state = jax.random.split(key)

    B = 8  # small demo batch
    state = jax.random.normal(k_state, (B, D_IN), jnp.float32)
    w1, b1, w2, b2 = init_params(k_params)

    # Pure-JAX reference (eval-mode dropout == identity).
    ref = jnp.squeeze(jnp.maximum(state @ w1 + b1, 0.0) @ w2 + b2)

    # f32 path (matches the PyTorch module's forward).
    value = jax.block_until_ready(critic_forward(state, w1, b1, w2, b2))
    assert value.shape == (B,)
    assert jnp.allclose(value, ref, atol=1e-3, rtol=1e-3)

    # bf16 MXU fast path (recommended on v5e); f32 accumulation, looser tolerance.
    value_bf16 = jax.block_until_ready(
        critic_forward(state, w1, b1, w2, b2, compute_dtype=jnp.bfloat16))
    assert value_bf16.shape == (B,)
    assert jnp.allclose(value_bf16, ref, atol=5e-2, rtol=5e-2)

    # Batch not divisible by the tile: exercises multi-step grid + masked
    # partial edge block (no jnp.pad copy of the input).
    B2 = 300
    state2 = jax.random.normal(jax.random.PRNGKey(1), (B2, D_IN), jnp.float32)
    ref2 = jnp.squeeze(jnp.maximum(state2 @ w1 + b1, 0.0) @ w2 + b2)
    value2 = jax.block_until_ready(critic_forward(state2, w1, b1, w2, b2))
    assert value2.shape == (B2,)
    assert jnp.allclose(value2, ref2, atol=1e-3, rtol=1e-3)

    print("KERNEL_OK")
</pallas_src>

<mosaic_0001>
module attributes {stable_mosaic.version = 11 : i64} {
  func.func @_critic_kernel(%arg0: i32, %arg1: memref<8x768xf32, #tpu.memory_space<vmem>>, %arg2: memref<768x512xf32, #tpu.memory_space<vmem>>, %arg3: memref<1x512xf32, #tpu.memory_space<vmem>>, %arg4: memref<512x1xf32, #tpu.memory_space<vmem>>, %arg5: memref<1xf32, #tpu.memory_space<smem>>, %arg6: memref<8x1xf32, #tpu.memory_space<vmem>>) attributes {dimension_semantics = [#tpu.dimension_semantics<parallel>], iteration_bounds = array<i64: 1>, scalar_prefetch = 0 : i64, scratch_operands = 0 : i64, tpu.core_type = #tpu.core_type<tc>, window_params = [{transform_indices = @transform_0, window_bounds = array<i64: 8, 768>}, {pipeline_mode = #tpu.pipeline_mode<synchronous>, transform_indices = @transform_1, window_bounds = array<i64: 768, 512>}, {pipeline_mode = #tpu.pipeline_mode<synchronous>, transform_indices = @transform_2, window_bounds = array<i64: 1, 512>}, {pipeline_mode = #tpu.pipeline_mode<synchronous>, transform_indices = @transform_3, window_bounds = array<i64: 512, 1>}, {transform_indices = @transform_4, window_bounds = array<i64: 1>}, {transform_indices = @transform_5, window_bounds = array<i64: 8, 1>}]} {
    %c0 = arith.constant 0 : index
    %c0_0 = arith.constant 0 : index
    %0 = vector.load %arg1[%c0, %c0_0] : memref<8x768xf32, #tpu.memory_space<vmem>>, vector<8x768xf32>
    %c0_1 = arith.constant 0 : index
    %c0_2 = arith.constant 0 : index
    %1 = vector.load %arg2[%c0_1, %c0_2] : memref<768x512xf32, #tpu.memory_space<vmem>>, vector<768x512xf32>
    %cst = arith.constant dense<0.000000e+00> : vector<8x512xf32>
    %2 = tpu.matmul %0, %1, %cst {dimension_numbers = #tpu.dot_dimension_numbers<[1], [0], [0], [1], [0, 0, 1, 1], [], []>} : vector<8x768xf32>, vector<768x512xf32>, vector<8x512xf32> -> vector<8x512xf32>
    %c0_3 = arith.constant 0 : index
    %c0_4 = arith.constant 0 : index
    %3 = vector.load %arg3[%c0_3, %c0_4] : memref<1x512xf32, #tpu.memory_space<vmem>>, vector<1x512xf32>
    %4 = vector.broadcast %3 : vector<1x512xf32> to vector<8x512xf32>
    %5 = arith.addf %2, %4 : vector<8x512xf32>
    %cst_5 = arith.constant 0.000000e+00 : f32
    %6 = vector.broadcast %cst_5 : f32 to vector<8x512xf32>
    %7 = arith.maximumf %5, %6 : vector<8x512xf32>
    %c0_6 = arith.constant 0 : index
    %c0_7 = arith.constant 0 : index
    %8 = vector.load %arg4[%c0_6, %c0_7] : memref<512x1xf32, #tpu.memory_space<vmem>>, vector<512x1xf32>
    %cst_8 = arith.constant dense<0.000000e+00> : vector<8x1xf32>
    %9 = tpu.matmul %7, %8, %cst_8 {dimension_numbers = #tpu.dot_dimension_numbers<[1], [0], [0], [1], [0, 0, 1, 1], [], []>} : vector<8x512xf32>, vector<512x1xf32>, vector<8x1xf32> -> vector<8x1xf32>
    %c0_9 = arith.constant 0 : index
    %10 = memref.load %arg5[%c0_9] : memref<1xf32, #tpu.memory_space<smem>>
    %11 = vector.broadcast %10 : f32 to vector<8x1xf32>
    %12 = arith.addf %9, %11 : vector<8x1xf32>
    %c0_10 = arith.constant 0 : index
    %c0_11 = arith.constant 0 : index
    %13 = vector.load %arg6[%c0_10, %c0_11] : memref<8x1xf32, #tpu.memory_space<vmem>>, vector<8x1xf32>
    tpu.vector_store %arg6[%c0_10, %c0_11], %12 {strides = array<i32>} : memref<8x1xf32, #tpu.memory_space<vmem>>, vector<8x1xf32>,
    return
  }
  func.func @transform_0(%arg0: i32) -> (i32, i32) {
    %c0_i32 = arith.constant 0 : i32
    %c0_i32_0 = arith.constant 0 : i32
    return %arg0, %c0_i32 : i32, i32
  }
  func.func @transform_1(%arg0: i32) -> (i32, i32) {
    %c0_i32 = arith.constant 0 : i32
    %c0_i32_0 = arith.constant 0 : i32
    %c0_i32_1 = arith.constant 0 : i32
    return %c0_i32, %c0_i32_0 : i32, i32
  }
  func.func @transform_2(%arg0: i32) -> (i32, i32) {
    %c0_i32 = arith.constant 0 : i32
    %c0_i32_0 = arith.constant 0 : i32
    %c0_i32_1 = arith.constant 0 : i32
    return %c0_i32, %c0_i32_0 : i32, i32
  }
  func.func @transform_3(%arg0: i32) -> (i32, i32) {
    %c0_i32 = arith.constant 0 : i32
    %c0_i32_0 = arith.constant 0 : i32
    %c0_i32_1 = arith.constant 0 : i32
    return %c0_i32, %c0_i32_0 : i32, i32
  }
  func.func @transform_4(%arg0: i32) -> i32 {
    %c0_i32 = arith.constant 0 : i32
    %c0_i32_0 = arith.constant 0 : i32
    return %c0_i32 : i32
  }
  func.func @transform_5(%arg0: i32) -> (i32, i32) {
    %c0_i32 = arith.constant 0 : i32
    %c0_i32_0 = arith.constant 0 : i32
    return %arg0, %c0_i32 : i32, i32
  }
}

</mosaic_0001>

<bundles_post_ra>
// kernel: tpu_custom_call.1
= control target key start
LH: loop header
LB: loop body
LE: loop exit
PB: predicated region body
PF: predicated region fallthrough
CT: control target
= control target key end

     0   :  { %11 = vsyncpa [#allocation4], 0  ;;  %s1988_s0 = inlined_call_operand.hbm [shape: f32[8,768], index: 0, kind: input, shape index: {}]   ;;  %s1989_s1 = inlined_call_operand.hbm [shape: f32[768,512], index: 1, kind: input, shape index: {}]   ;;  %s1990_s2 = inlined_call_operand.hbm [shape: f32[1,512], index: 2, kind: input, shape index: {}]   ;;  %s1991_s3 = inlined_call_operand.vmem [shape: f32[512,1], index: 3, kind: input, shape index: {}]   ;;  %s1992_s4 = inlined_call_operand.<no memory space> [shape: f32[1], index: 4, kind: input, shape index: {}]   ;;  %s1993_s5 = inlined_call_operand.vmem [shape: f32[8,1], index: 5, kind: output, shape index: {}]  }
   0x1   :  { %12 = vsyncpa [#allocation6], 0  ;;  %s1719_s18 = smov [#allocation5]   ;;  %s1649_s22 = scalar_lea.hbm %s1989_s1, 49152 }
   0x2   :  { %s28_s19 = sshll.u32 %s1719_s18, 4  ;;  %p1650_p0 = scmp.ne.s32.totalorder %s1989_s1, %s1649_s22  ;;  %s29_s19 = int_to_ptr.vmem [resolvable:$true] %s28_s19 }
   0x3   :  { %p1653_p1 = scmp.lt.u32.totalorder %s1649_s22, %s1989_s1 }
   0x5   :  { %p1655_p2 = pnand %p1653_p1, %p1650_p0 }
   0x7   :  { %1658 = shalt.err (!%p1655_p2)
}
   0x8   :  { %s1659_s27 = scalar_lea.vmem %s29_s19, 49152  ;;  %p1664_p4 = scmp.lt.s32.totalorder %s29_s19, %s29_s19 }
   0x9   :  { %p1660_p3 = scmp.ne.s32.totalorder %s29_s19, %s1659_s27  ;;  %p1665_p5 = scmp.lt.s32.totalorder %s1659_s27, %s1659_s27 }
   0xb   :  { %p1666_p6 = por %p1665_p5, %p1664_p4 }
   0xd   :  { %p1667_p7 = pnand %p1666_p6, %p1660_p3 }
   0xf   :  { %1670 = shalt.err (!%p1667_p7)
}
  0x10   :  { %s1720_s28 = smov 512   ;;  %s1721_s29 = smov 32  }
  0x11   :  { %34 = dma.hbm_to_vmem [thread:$0]  %s1989_s1, 49152, %s29_s19, [#allocation6], %s1720_s28, %s1720_s28, %s1721_s29  }
  0x12   :  { %s1722_s7 = smov [#allocation3]   ;;  %s1723_s9 = smov [#allocation7]  }
  0x13   :  { %s19_s8 = sshll.u32 %s1722_s7, 4  ;;  %s41_s10 = sshll.u32 %s1723_s9, 4  ;;  %s20_s8 = int_to_ptr.vmem [resolvable:$true] %s19_s8  ;;  %s42_s10 = int_to_ptr.vmem [resolvable:$true] %s41_s10 }
  0x14   :  { %s1671_s13 = scalar_lea.hbm %s1988_s0, 768 }
  0x15   :  { %p1672_p8 = scmp.ne.s32.totalorder %s1988_s0, %s1671_s13  ;;  %p1675_p9 = scmp.lt.u32.totalorder %s1671_s13, %s1988_s0 }
  0x17   :  { %p1677_p10 = pnand %p1675_p9, %p1672_p8 }
  0x19   :  { %1680 = shalt.err (!%p1677_p10)
}
  0x1a   :  { %s1681_s1 = scalar_lea.vmem %s20_s8, 768  ;;  %p1686_p12 = scmp.lt.s32.totalorder %s20_s8, %s20_s8 }
  0x1b   :  { %p1682_p11 = scmp.ne.s32.totalorder %s20_s8, %s1681_s1  ;;  %p1687_p13 = scmp.lt.s32.totalorder %s1681_s1, %s1681_s1 }
  0x1d   :  { %p1688_p0 = por %p1687_p13, %p1686_p12 }
  0x1f   :  { %p1689_p1 = pnand %p1688_p0, %p1682_p11 }
  0x21   :  { %1692 = shalt.err (!%p1689_p1)
}
  0x22   :  { %22 = dma.hbm_to_vmem [thread:$0]  %s1988_s0, 768, %s20_s8, [#allocation4]  }
  0x23   :  { %s1693_s22 = scalar_lea.hbm %s1990_s2, 64 }
  0x24   :  { %p1694_p2 = scmp.ne.s32.totalorder %s1990_s2, %s1693_s22  ;;  %p1697_p3 = scmp.lt.u32.totalorder %s1693_s22, %s1990_s2 }
  0x26   :  { %p1699_p4 = pnand %p1697_p3, %p1694_p2 }
  0x28   :  { %1702 = shalt.err (!%p1699_p4)
}
  0x29   :  { %s1703_s27 = scalar_lea.vmem %s42_s10, 64  ;;  %p1708_p6 = scmp.lt.s32.totalorder %s42_s10, %s42_s10 }
  0x2a   :  { %p1704_p5 = scmp.ne.s32.totalorder %s42_s10, %s1703_s27  ;;  %p1709_p7 = scmp.lt.s32.totalorder %s1703_s27, %s1703_s27 }
  0x2c   :  { %p1710_p8 = por %p1709_p7, %p1708_p6 }
  0x2e   :  { %p1711_p9 = pnand %p1710_p8, %p1704_p5 }
  0x30   :  { %1714 = shalt.err (!%p1711_p9)
}
  0x31   :  { %44 = dma.hbm_to_vmem [thread:$0]  %s1990_s2, 64, %s42_s10, [#allocation6]  }
  0x32   :  { %1715 = dma.done.wait [#allocation4], 768  }
  0x33   :  { %1716 = vsyncadd [#allocation4], 4294966528 }
  0x34   :  { %1717 = dma.done.wait [#allocation6], 49216  }
  0x35   :  { %1718 = vsyncadd [#allocation6], 4294918080  ;;  %v65_v0 = vld [vmem:[#allocation5 + $0x8] sm:$0xff]  ;;  %v67_v2 = vld [vmem:[#allocation5 + $0x18] sm:$0xff]  ;;  %vm1106_vm0 = vcmask 7168  }
  0x36   :  { %v69_v1 = vld [vmem:[#allocation5 + $0x28] sm:$0xff]  ;;  %v71_v4 = vld [vmem:[#allocation5 + $0x38] sm:$0xff]  ;;  %v64_v5 = vld [vmem:[#allocation5] sm:$0xff] }
  0x37   :  { %v1184_v3 = vpack.c.bf16 %v69_v1, %v65_v0  ;;  %v68_v6 = vld [vmem:[#allocation5 + $0x20] sm:$0xff]  ;;  %v1376_v7 = vpack.c.bf16 %v71_v4, %v67_v2  ;;  %v66_v9 = vld [vmem:[#allocation5 + $0x10] sm:$0xff]  ;;  %v73_v11 = vld [vmem:[#allocation5 + $0x48] sm:$0xff] }
  0x38   :  { %v1186_v8 = vpack.c.bf16 %v68_v6, %v64_v5  ;;  %v70_v10 = vld [vmem:[#allocation5 + $0x30] sm:$0xff]  ;;  %v77_v13 = vld [vmem:[#allocation5 + $0x68] sm:$0xff]  ;;  %v75_v14 = vld [vmem:[#allocation5 + $0x58] sm:$0xff] }
  0x39   :  { %1185 = vmatprep.subr.bf16.mxu0 %v1184_v3  ;;  %v1378_v12 = vpack.c.bf16 %v70_v10, %v66_v9  ;;  %v79_v15 = vld [vmem:[#allocation5 + $0x78] sm:$0xff]  ;;  %1377 = vmatprep.subr.bf16.mxu1 %v1376_v7  ;;  %v1188_v16 = vpack.c.bf16 %v77_v13, %v73_v11  ;;  %v72_v18 = vld [vmem:[#allocation5 + $0x40] sm:$0xff]  ;;  %v74_v20 = vld [vmem:[#allocation5 + $0x50] sm:$0xff] }
  0x3a   :  { %1187 = vmatpush1.bf16.msra.mxu0 %v1186_v8  ;;  %v1380_v17 = vpack.c.bf16 %v79_v15, %v75_v14  ;;  %v76_v19 = vld [vmem:[#allocation5 + $0x60] sm:$0xff]  ;;  %v78_v22 = vld [vmem:[#allocation5 + $0x70] sm:$0xff]  ;;  %v81_v23 = vld [vmem:[#allocation5 + $0x88] sm:$0xff] }
  0x3b   :  { %1379 = vmatpush1.bf16.msra.mxu1 %v1378_v12  ;;  %v1190_v21 = vpack.c.bf16 %v76_v19, %v72_v18  ;;  %v85_v24 = vld [vmem:[#allocation5 + $0xa8] sm:$0xff]  ;;  %1189 = vmatprep.subr.bf16.mxu0 %v1188_v16  ;;  %v1382_v25 = vpack.c.bf16 %v78_v22, %v74_v20  ;;  %v83_v27 = vld [vmem:[#allocation5 + $0x98] sm:$0xff]  ;;  %v80_v29 = vld [vmem:[#allocation5 + $0x80] sm:$0xff] }
  0x3c   :  { %1381 = vmatprep.subr.bf16.mxu1 %v1380_v17  ;;  %v1192_v26 = vpack.c.bf16 %v85_v24, %v81_v23  ;;  %v87_v28 = vld [vmem:[#allocation5 + $0xb8] sm:$0xff]  ;;  %v84_v31 = vld [vmem:[#allocation5 + $0xa0] sm:$0xff]  ;;  %v82_v32 = vld [vmem:[#allocation5 + $0x90] sm:$0xff] }
  0x3d   :  { %v1384_v30 = vpack.c.bf16 %v87_v28, %v83_v27  ;;  %v86_v33 = vld [vmem:[#allocation5 + $0xb0] sm:$0xff]  ;;  %v1194_v34 = vpack.c.bf16 %v84_v31, %v80_v29  ;;  %v89_v35 = vld [vmem:[#allocation5 + $0xc8] sm:$0xff]  ;;  %v91_v37 = vld [vmem:[#allocation5 + $0xd8] sm:$0xff] }
  0x3e   :  { %1191 = vmatpush1.bf16.msra.mxu0 %v1190_v21  ;;  %v93_v36 = vld [vmem:[#allocation5 + $0xe8] sm:$0xff]  ;;  %v1386_v38 = vpack.c.bf16 %v86_v33, %v82_v32  ;;  %v95_v40 = vld [vmem:[#allocation5 + $0xf8] sm:$0xff]  ;;  %v88_v41 = vld [vmem:[#allocation5 + $0xc0] sm:$0xff] }
  0x3f   :  { %1383 = vmatpush1.bf16.msra.mxu1 %v1382_v25  ;;  %1193 = vmatprep.subr.bf16.mxu0 %v1192_v26  ;;  %v1196_v39 = vpack.c.bf16 %v93_v36, %v89_v35  ;;  %v92_v42 = vld [vmem:[#allocation5 + $0xe0] sm:$0xff]  ;;  %v1388_v43 = vpack.c.bf16 %v95_v40, %v91_v37  ;;  %v90_v44 = vld [vmem:[#allocation5 + $0xd0] sm:$0xff]  ;;  %v97_v46 = vld [vmem:[#allocation5 + $0x108] sm:$0xff] }
  0x40   :  { %1385 = vmatprep.subr.bf16.mxu1 %v1384_v30  ;;  %v94_v45 = vld [vmem:[#allocation5 + $0xf0] sm:$0xff]  ;;  %v101_v47 = vld [vmem:[#allocation5 + $0x128] sm:$0xff]  ;;  %v99_v48 = vld [vmem:[#allocation5 + $0x118] sm:$0xff]  ;;  %v1198_v50 = vpack.c.bf16 %v92_v42, %v88_v41 }
  0x41   :  { %v103_v49 = vld [vmem:[#allocation5 + $0x138] sm:$0xff]  ;;  %v1390_v51 = vpack.c.bf16 %v94_v45, %v90_v44  ;;  %v1200_v52 = vpack.c.bf16 %v101_v47, %v97_v46  ;;  %v96_v53 = vld [vmem:[#allocation5 + $0x100] sm:$0xff]  ;;  %v98_v55 = vld [vmem:[#allocation5 + $0x110] sm:$0xff] }
  0x42   :  { %1195 = vmatpush1.bf16.msra.mxu0 %v1194_v34  ;;  %v100_v54 = vld [vmem:[#allocation5 + $0x120] sm:$0xff]  ;;  %v1392_v56 = vpack.c.bf16 %v103_v49, %v99_v48  ;;  %v102_v57 = vld [vmem:[#allocation5 + $0x130] sm:$0xff]  ;;  %v105_v58 = vld [vmem:[#allocation5 + $0x148] sm:$0xff] }
  0x43   :  { %1387 = vmatpush1.bf16.msra.mxu1 %v1386_v38  ;;  %1197 = vmatprep.subr.bf16.mxu0 %v1196_v39  ;;  %v109_v59 = vld [vmem:[#allocation5 + $0x168] sm:$0xff]  ;;  %v107_v60 = vld [vmem:[#allocation5 + $0x158] sm:$0xff]  ;;  %v1202_v62 = vpack.c.bf16 %v100_v54, %v96_v53  ;;  %v1394_v63 = vpack.c.bf16 %v102_v57, %v98_v55  ;;  %v104_v1 = vld [vmem:[#allocation5 + $0x140] sm:$0xff] }
  0x44   :  { %1389 = vmatprep.subr.bf16.mxu1 %v1388_v43  ;;  %v111_v61 = vld [vmem:[#allocation5 + $0x178] sm:$0xff]  ;;  %v1204_v0 = vpack.c.bf16 %v109_v59, %v105_v58  ;;  %v108_v2 = vld [vmem:[#allocation5 + $0x160] sm:$0xff]  ;;  %v106_v3 = vld [vmem:[#allocation5 + $0x150] sm:$0xff] }
  0x45   :  { %v1396_v4 = vpack.c.bf16 %v111_v61, %v107_v60  ;;  %v110_v5 = vld [vmem:[#allocation5 + $0x170] sm:$0xff]  ;;  %v113_v6 = vld [vmem:[#allocation5 + $0x188] sm:$0xff]  ;;  %v115_v8 = vld [vmem:[#allocation5 + $0x198] sm:$0xff]  ;;  %v1206_v10 = vpack.c.bf16 %v108_v2, %v104_v1 }
  0x46   :  { %1199 = vmatpush1.bf16.msra.mxu0 %v1198_v50  ;;  %v117_v7 = vld [vmem:[#allocation5 + $0x1a8] sm:$0xff]  ;;  %v119_v9 = vld [vmem:[#allocation5 + $0x1b8] sm:$0xff]  ;;  %v1398_v11 = vpack.c.bf16 %v110_v5, %v106_v3  ;;  %v112_v13 = vld [vmem:[#allocation5 + $0x180] sm:$0xff] }
  0x47   :  { %1391 = vmatpush1.bf16.msra.mxu1 %v1390_v51  ;;  %1201 = vmatprep.subr.bf16.mxu0 %v1200_v52  ;;  %v1208_v12 = vpack.c.bf16 %v117_v7, %v113_v6  ;;  %v116_v14 = vld [vmem:[#allocation5 + $0x1a0] sm:$0xff]  ;;  %v114_v15 = vld [vmem:[#allocation5 + $0x190] sm:$0xff]  ;;  %v1400_v16 = vpack.c.bf16 %v119_v9, %v115_v8  ;;  %v121_v18 = vld [vmem:[#allocation5 + $0x1c8] sm:$0xff] }
  0x48   :  { %1393 = vmatprep.subr.bf16.mxu1 %v1392_v56  ;;  %v118_v17 = vld [vmem:[#allocation5 + $0x1b0] sm:$0xff]  ;;  %v125_v19 = vld [vmem:[#allocation5 + $0x1e8] sm:$0xff]  ;;  %v123_v20 = vld [vmem:[#allocation5 + $0x1d8] sm:$0xff]  ;;  %v1210_v22 = vpack.c.bf16 %v116_v14, %v112_v13 }
  0x49   :  { %v127_v21 = vld [vmem:[#allocation5 + $0x1f8] sm:$0xff]  ;;  %v1402_v23 = vpack.c.bf16 %v118_v17, %v114_v15  ;;  %v1212_v24 = vpack.c.bf16 %v125_v19, %v121_v18  ;;  %v120_v25 = vld [vmem:[#allocation5 + $0x1c0] sm:$0xff]  ;;  %v122_v27 = vld [vmem:[#allocation5 + $0x1d0] sm:$0xff] }
  0x4a   :  { %1203 = vmatpush1.bf16.msra.mxu0 %v1202_v62  ;;  %v124_v26 = vld [vmem:[#allocation5 + $0x1e0] sm:$0xff]  ;;  %v1404_v28 = vpack.c.bf16 %v127_v21, %v123_v20  ;;  %v126_v29 = vld [vmem:[#allocation5 + $0x1f0] sm:$0xff]  ;;  %v129_v30 = vld [vmem:[#allocation5 + $0x208] sm:$0xff] }
  0x4b   :  { %1395 = vmatpush1.bf16.msra.mxu1 %v1394_v63  ;;  %1205 = vmatprep.subr.bf16.mxu0 %v1204_v0  ;;  %v133_v31 = vld [vmem:[#allocation5 + $0x228] sm:$0xff]  ;;  %v131_v32 = vld [vmem:[#allocation5 + $0x218] sm:$0xff]  ;;  %v1214_v34 = vpack.c.bf16 %v124_v26, %v120_v25  ;;  %v1406_v35 = vpack.c.bf16 %v126_v29, %v122_v27  ;;  %v128_v37 = vld [vmem:[#allocation5 + $0x200] sm:$0xff] }
  0x4c   :  { %1397 = vmatprep.subr.bf16.mxu1 %v1396_v4  ;;  %v135_v33 = vld [vmem:[#allocation5 + $0x238] sm:$0xff]  ;;  %v1216_v36 = vpack.c.bf16 %v133_v31, %v129_v30  ;;  %v132_v38 = vld [vmem:[#allocation5 + $0x220] sm:$0xff]  ;;  %v130_v39 = vld [vmem:[#allocation5 + $0x210] sm:$0xff] }
  0x4d   :  { %v1408_v40 = vpack.c.bf16 %v135_v33, %v131_v32  ;;  %v134_v41 = vld [vmem:[#allocation5 + $0x230] sm:$0xff]  ;;  %v137_v42 = vld [vmem:[#allocation5 + $0x248] sm:$0xff]  ;;  %v139_v44 = vld [vmem:[#allocation5 + $0x258] sm:$0xff]  ;;  %v1218_v46 = vpack.c.bf16 %v132_v38, %v128_v37 }
  0x4e   :  { %1207 = vmatpush1.bf16.msra.mxu0 %v1206_v10  ;;  %v141_v43 = vld [vmem:[#allocation5 + $0x268] sm:$0xff]  ;;  %v143_v45 = vld [vmem:[#allocation5 + $0x278] sm:$0xff]  ;;  %v1410_v47 = vpack.c.bf16 %v134_v41, %v130_v39  ;;  %v136_v49 = vld [vmem:[#allocation5 + $0x240] sm:$0xff] }
  0x4f   :  { %1399 = vmatpush1.bf16.msra.mxu1 %v1398_v11  ;;  %1209 = vmatprep.subr.bf16.mxu0 %v1208_v12  ;;  %v1220_v48 = vpack.c.bf16 %v141_v43, %v137_v42  ;;  %v140_v50 = vld [vmem:[#allocation5 + $0x260] sm:$0xff]  ;;  %v138_v51 = vld [vmem:[#allocation5 + $0x250] sm:$0xff]  ;;  %v1412_v52 = vpack.c.bf16 %v143_v45, %v139_v44  ;;  %v145_v54 = vld [vmem:[#allocation5 + $0x288] sm:$0xff] }
  0x50   :  { %1401 = vmatprep.subr.bf16.mxu1 %v1400_v16  ;;  %v142_v53 = vld [vmem:[#allocation5 + $0x270] sm:$0xff]  ;;  %v149_v55 = vld [vmem:[#allocation5 + $0x2a8] sm:$0xff]  ;;  %v147_v56 = vld [vmem:[#allocation5 + $0x298] sm:$0xff]  ;;  %v1222_v58 = vpack.c.bf16 %v140_v50, %v136_v49 }
  0x51   :  { %v151_v57 = vld [vmem:[#allocation5 + $0x2b8] sm:$0xff]  ;;  %v1414_v59 = vpack.c.bf16 %v142_v53, %v138_v51  ;;  %v1224_v60 = vpack.c.bf16 %v149_v55, %v145_v54  ;;  %v144_v61 = vld [vmem:[#allocation5 + $0x280] sm:$0xff]  ;;  %v146_v63 = vld [vmem:[#allocation5 + $0x290] sm:$0xff] }
  0x52   :  { %1211 = vmatpush1.bf16.msra.mxu0 %v1210_v22  ;;  %v148_v62 = vld [vmem:[#allocation5 + $0x2a0] sm:$0xff]  ;;  %v1416_v0 = vpack.c.bf16 %v151_v57, %v147_v56  ;;  %v150_v1 = vld [vmem:[#allocation5 + $0x2b0] sm:$0xff]  ;;  %v153_v2 = vld [vmem:[#allocation5 + $0x2c8] sm:$0xff] }
  0x53   :  { %1403 = vmatpush1.bf16.msra.mxu1 %v1402_v23  ;;  %1213 = vmatprep.subr.bf16.mxu0 %v1212_v24  ;;  %v157_v3 = vld [vmem:[#allocation5 + $0x2e8] sm:$0xff]  ;;  %v155_v4 = vld [vmem:[#allocation5 + $0x2d8] sm:$0xff]  ;;  %v1226_v6 = vpack.c.bf16 %v148_v62, %v144_v61  ;;  %v152_v7 = vld [vmem:[#allocation5 + $0x2c0] sm:$0xff]  ;;  %v1418_v8 = vpack.c.bf16 %v150_v1, %v146_v63 }
  0x54   :  { %1405 = vmatprep.subr.bf16.mxu1 %v1404_v28  ;;  %v159_v5 = vld [vmem:[#allocation5 + $0x2f8] sm:$0xff]  ;;  %v1228_v9 = vpack.c.bf16 %v157_v3, %v153_v2  ;;  %v156_v10 = vld [vmem:[#allocation5 + $0x2e0] sm:$0xff]  ;;  %v154_v11 = vld [vmem:[#allocation5 + $0x2d0] sm:$0xff] }
  0x55   :  { %v158_v12 = vld [vmem:[#allocation5 + $0x2f0] sm:$0xff]  ;;  %v1420_v13 = vpack.c.bf16 %v159_v5, %v155_v4  ;;  %v161_v14 = vld [vmem:[#allocation5 + $0x308] sm:$0xff]  ;;  %v59_v16 = vld [vmem:[#allocation3 + $0x8] sm:$0xff]  ;;  %v1230_v19 = vpack.c.bf16 %v156_v10, %v152_v7 }
  0x56   :  { %1215 = vmatpush1.bf16.msra.mxu0 %v1214_v34  ;;  %v165_v15 = vld [vmem:[#allocation5 + $0x328] sm:$0xff]  ;;  %v163_v17 = vld [vmem:[#allocation5 + $0x318] sm:$0xff]  ;;  %534 = vmatprep.mubr.f32.mxu0 %v59_v16  ;;  %v1422_v20 = vpack.c.bf16 %v158_v12, %v154_v11  ;;  %v160_v22 = vld [vmem:[#allocation5 + $0x300] sm:$0xff] }
  0x57   :  { %1407 = vmatpush1.bf16.msra.mxu1 %v1406_v35  ;;  %1217 = vmatprep.subr.bf16.mxu0 %v1216_v36  ;;  %v167_v18 = vld [vmem:[#allocation5 + $0x338] sm:$0xff]  ;;  %v1232_v21 = vpack.c.bf16 %v165_v15, %v161_v14  ;;  %v164_v23 = vld [vmem:[#allocation5 + $0x320] sm:$0xff]  ;;  %v162_v24 = vld [vmem:[#allocation5 + $0x310] sm:$0xff] }
  0x58   :  { %1409 = vmatprep.subr.bf16.mxu1 %v1408_v40  ;;  %747 = vmatprep.mubr.f32.mxu1 %v59_v16  ;;  %v1424_v25 = vpack.c.bf16 %v167_v18, %v163_v17  ;;  %v166_v26 = vld [vmem:[#allocation5 + $0x330] sm:$0xff]  ;;  %v169_v27 = vld [vmem:[#allocation5 + $0x348] sm:$0xff]  ;;  %v171_v29 = vld [vmem:[#allocation5 + $0x358] sm:$0xff]  ;;  %v1234_v31 = vpack.c.bf16 %v164_v23, %v160_v22 }
  0x59   :  { %v173_v28 = vld [vmem:[#allocation5 + $0x368] sm:$0xff]  ;;  %v175_v30 = vld [vmem:[#allocation5 + $0x378] sm:$0xff]  ;;  %v1426_v32 = vpack.c.bf16 %v166_v26, %v162_v24  ;;  %v168_v34 = vld [vmem:[#allocation5 + $0x340] sm:$0xff] }
  0x5a   :  { %1219 = vmatpush1.bf16.msra.mxu0 %v1218_v46  ;;  %v1236_v33 = vpack.c.bf16 %v173_v28, %v169_v27  ;;  %v172_v35 = vld [vmem:[#allocation5 + $0x360] sm:$0xff]  ;;  %v170_v36 = vld [vmem:[#allocation5 + $0x350] sm:$0xff]  ;;  %v1428_v37 = vpack.c.bf16 %v175_v30, %v171_v29  ;;  %v177_v39 = vld [vmem:[#allocation5 + $0x388] sm:$0xff] }
  0x5b   :  { %1411 = vmatpush1.bf16.msra.mxu1 %v1410_v47  ;;  %1221 = vmatprep.subr.bf16.mxu0 %v1220_v48  ;;  %v174_v38 = vld [vmem:[#allocation5 + $0x370] sm:$0xff]  ;;  %v181_v40 = vld [vmem:[#allocation5 + $0x3a8] sm:$0xff]  ;;  %v179_v41 = vld [vmem:[#allocation5 + $0x398] sm:$0xff]  ;;  %v1238_v43 = vpack.c.bf16 %v172_v35, %v168_v34 }
  0x5c   :  { %1413 = vmatprep.subr.bf16.mxu1 %v1412_v52  ;;  %v183_v42 = vld [vmem:[#allocation5 + $0x3b8] sm:$0xff]  ;;  %v1430_v44 = vpack.c.bf16 %v174_v38, %v170_v36  ;;  %v1240_v45 = vpack.c.bf16 %v181_v40, %v177_v39  ;;  %v176_v46 = vld [vmem:[#allocation5 + $0x380] sm:$0xff]  ;;  %v178_v48 = vld [vmem:[#allocation5 + $0x390] sm:$0xff] }
  0x5d   :  { %v180_v47 = vld [vmem:[#allocation5 + $0x3a0] sm:$0xff]  ;;  %v1432_v49 = vpack.c.bf16 %v183_v42, %v179_v41  ;;  %v182_v50 = vld [vmem:[#allocation5 + $0x3b0] sm:$0xff]  ;;  %v185_v51 = vld [vmem:[#allocation5 + $0x3c8] sm:$0xff] }
  0x5e   :  { %1223 = vmatpush1.bf16.msra.mxu0 %v1222_v58  ;;  %v189_v52 = vld [vmem:[#allocation5 + $0x3e8] sm:$0xff]  ;;  %v187_v53 = vld [vmem:[#allocation5 + $0x3d8] sm:$0xff]  ;;  %v1242_v55 = vpack.c.bf16 %v180_v47, %v176_v46  ;;  %v1434_v56 = vpack.c.bf16 %v182_v50, %v178_v48  ;;  %v184_v58 = vld [vmem:[#allocation5 + $0x3c0] sm:$0xff] }
  0x5f   :  { %1415 = vmatpush1.bf16.msra.mxu1 %v1414_v59  ;;  %1225 = vmatprep.subr.bf16.mxu0 %v1224_v60  ;;  %v191_v54 = vld [vmem:[#allocation5 + $0x3f8] sm:$0xff]  ;;  %v1244_v57 = vpack.c.bf16 %v189_v52, %v185_v51  ;;  %v188_v59 = vld [vmem:[#allocation5 + $0x3e0] sm:$0xff]  ;;  %v186_v60 = vld [vmem:[#allocation5 + $0x3d0] sm:$0xff] }
  0x60   :  { %1417 = vmatprep.subr.bf16.mxu1 %v1416_v0  ;;  %v1436_v61 = vpack.c.bf16 %v191_v54, %v187_v53  ;;  %v190_v62 = vld [vmem:[#allocation5 + $0x3f0] sm:$0xff]  ;;  %v193_v63 = vld [vmem:[#allocation5 + $0x408] sm:$0xff]  ;;  %v195_v1 = vld [vmem:[#allocation5 + $0x418] sm:$0xff]  ;;  %v1246_v3 = vpack.c.bf16 %v188_v59, %v184_v58 }
  0x61   :  { %v197_v0 = vld [vmem:[#allocation5 + $0x428] sm:$0xff]  ;;  %v199_v2 = vld [vmem:[#allocation5 + $0x438] sm:$0xff]  ;;  %v1438_v4 = vpack.c.bf16 %v190_v62, %v186_v60  ;;  %v196_v7 = vld [vmem:[#allocation5 + $0x420] sm:$0xff] }
  0x62   :  { %1227 = vmatpush1.bf16.msra.mxu0 %v1226_v6  ;;  %v1248_v5 = vpack.c.bf16 %v197_v0, %v193_v63  ;;  %v192_v6 = vld [vmem:[#allocation5 + $0x400] sm:$0xff]  ;;  %v198_v10 = vld [vmem:[#allocation5 + $0x430] sm:$0xff]  ;;  %v201_v11 = vld [vmem:[#allocation5 + $0x448] sm:$0xff] }
  0x63   :  { %1419 = vmatpush1.bf16.msra.mxu1 %v1418_v8  ;;  %1229 = vmatprep.subr.bf16.mxu0 %v1228_v9  ;;  %v194_v8 = vld [vmem:[#allocation5 + $0x410] sm:$0xff]  ;;  %v1440_v9 = vpack.c.bf16 %v199_v2, %v195_v1  ;;  %v205_v12 = vld [vmem:[#allocation5 + $0x468] sm:$0xff]  ;;  %v207_v14 = vld [vmem:[#allocation5 + $0x478] sm:$0xff]  ;;  %v1250_v16 = vpack.c.bf16 %v196_v7, %v192_v6 }
  0x64   :  { %1421 = vmatprep.subr.bf16.mxu1 %v1420_v13  ;;  %v203_v13 = vld [vmem:[#allocation5 + $0x458] sm:$0xff]  ;;  %v58_v15 = vld [vmem:[#allocation3] sm:$0xff]  ;;  %v1442_v17 = vpack.c.bf16 %v198_v10, %v194_v8  ;;  %v1252_v18 = vpack.c.bf16 %v205_v12, %v201_v11  ;;  %v209_v24 = vld [vmem:[#allocation5 + $0x488] sm:$0xff] }
  0x65   :  { %v1444_v22 = vpack.c.bf16 %v207_v14, %v203_v13  ;;  %v206_v23 = vld [vmem:[#allocation5 + $0x470] sm:$0xff]  ;;  %v211_v26 = vld [vmem:[#allocation5 + $0x498] sm:$0xff]  ;;  %v217_v36 = vld [vmem:[#allocation5 + $0x4c8] sm:$0xff] }
  0x66   :  { %1231 = vmatpush1.bf16.msra.mxu0 %v1230_v19  ;;  %v200_v19 = vld [vmem:[#allocation5 + $0x440] sm:$0xff]  ;;  %v215_v27 = vld [vmem:[#allocation5 + $0x4b8] sm:$0xff]  ;;  %v214_v35 = vld [vmem:[#allocation5 + $0x4b0] sm:$0xff] }
  0x67   :  { %1423 = vmatpush1.bf16.msra.mxu1 %v1422_v20  ;;  %1233 = vmatprep.subr.bf16.mxu0 %v1232_v21  ;;  %v204_v20 = vld [vmem:[#allocation5 + $0x460] sm:$0xff]  ;;  %v202_v21 = vld [vmem:[#allocation5 + $0x450] sm:$0xff]  ;;  %v1448_v34 = vpack.c.bf16 %v215_v27, %v211_v26  ;;  %v219_v38 = vld [vmem:[#allocation5 + $0x4d8] sm:$0xff] }
  0x68   :  { %1425 = vmatprep.subr.bf16.mxu1 %v1424_v25  ;;  %v213_v25 = vld [vmem:[#allocation5 + $0x4a8] sm:$0xff]  ;;  %v1254_v28 = vpack.c.bf16 %v204_v20, %v200_v19  ;;  %v1446_v29 = vpack.c.bf16 %v206_v23, %v202_v21  ;;  %v223_v39 = vld [vmem:[#allocation5 + $0x4f8] sm:$0xff]  ;;  %v222_v47 = vld [vmem:[#allocation5 + $0x4f0] sm:$0xff] }
  0x69   :  { %v1256_v30 = vpack.c.bf16 %v213_v25, %v209_v24  ;;  %v1452_v46 = vpack.c.bf16 %v223_v39, %v219_v38  ;;  %v225_v48 = vld [vmem:[#allocation5 + $0x508] sm:$0xff]  ;;  %v227_v50 = vld [vmem:[#allocation5 + $0x518] sm:$0xff]  ;;  %v230_v59 = vld [vmem:[#allocation5 + $0x530] sm:$0xff] }
  0x6a   :  { %1235 = vmatpush1.bf16.msra.mxu0 %v1234_v31  ;;  %v208_v31 = vld [vmem:[#allocation5 + $0x480] sm:$0xff]  ;;  %v231_v51 = vld [vmem:[#allocation5 + $0x538] sm:$0xff]  ;;  %v233_v60 = vld [vmem:[#allocation5 + $0x548] sm:$0xff] }
  0x6b   :  { %1427 = vmatpush1.bf16.msra.mxu1 %v1426_v32  ;;  %1237 = vmatprep.subr.bf16.mxu0 %v1236_v33  ;;  %v212_v32 = vld [vmem:[#allocation5 + $0x4a0] sm:$0xff]  ;;  %v210_v33 = vld [vmem:[#allocation5 + $0x490] sm:$0xff]  ;;  %v1456_v58 = vpack.c.bf16 %v231_v51, %v227_v50  ;;  %v235_v62 = vld [vmem:[#allocation5 + $0x558] sm:$0xff] }
  0x6c   :  { %1429 = vmatprep.subr.bf16.mxu1 %v1428_v37  ;;  %v221_v37 = vld [vmem:[#allocation5 + $0x4e8] sm:$0xff]  ;;  %v1258_v40 = vpack.c.bf16 %v212_v32, %v208_v31  ;;  %v1450_v41 = vpack.c.bf16 %v214_v35, %v210_v33  ;;  %v239_v63 = vld [vmem:[#allocation5 + $0x578] sm:$0xff]  ;;  %v238_v7 = vld [vmem:[#allocation5 + $0x570] sm:$0xff] }
  0x6d   :  { %v1260_v42 = vpack.c.bf16 %v221_v37, %v217_v36  ;;  %v1460_v6 = vpack.c.bf16 %v239_v63, %v235_v62  ;;  %v241_v8 = vld [vmem:[#allocation5 + $0x588] sm:$0xff]  ;;  %v243_v10 = vld [vmem:[#allocation5 + $0x598] sm:$0xff]  ;;  %v240_v13 = vld [vmem:[#allocation5 + $0x580] sm:$0xff] }
  0x6e   :  { %1239 = vmatpush1.bf16.msra.mxu0 %v1238_v43  ;;  %v216_v43 = vld [vmem:[#allocation5 + $0x4c0] sm:$0xff]  ;;  %v247_v11 = vld [vmem:[#allocation5 + $0x5b8] sm:$0xff]  ;;  %v249_v20 = vld [vmem:[#allocation5 + $0x5c8] sm:$0xff] }
  0x6f   :  { %1431 = vmatpush1.bf16.msra.mxu1 %v1430_v44  ;;  %1241 = vmatprep.subr.bf16.mxu0 %v1240_v45  ;;  %v220_v44 = vld [vmem:[#allocation5 + $0x4e0] sm:$0xff]  ;;  %v218_v45 = vld [vmem:[#allocation5 + $0x4d0] sm:$0xff]  ;;  %v1464_v19 = vpack.c.bf16 %v247_v11, %v243_v10  ;;  %v253_v21 = vld [vmem:[#allocation5 + $0x5e8] sm:$0xff] }
  0x70   :  { %1433 = vmatprep.subr.bf16.mxu1 %v1432_v49  ;;  %v229_v49 = vld [vmem:[#allocation5 + $0x528] sm:$0xff]  ;;  %v1262_v52 = vpack.c.bf16 %v220_v44, %v216_v43  ;;  %v1454_v53 = vpack.c.bf16 %v222_v47, %v218_v45  ;;  %v251_v23 = vld [vmem:[#allocation5 + $0x5d8] sm:$0xff]  ;;  %v1276_v27 = vpack.c.bf16 %v253_v21, %v249_v20  ;;  %v254_v32 = vld [vmem:[#allocation5 + $0x5f0] sm:$0xff] }
  0x71   :  { %v1264_v54 = vpack.c.bf16 %v229_v49, %v225_v48  ;;  %v255_v24 = vld [vmem:[#allocation5 + $0x5f8] sm:$0xff]  ;;  %v257_v33 = vld [vmem:[#allocation5 + $0x608] sm:$0xff]  ;;  %v262_v44 = vld [vmem:[#allocation5 + $0x630] sm:$0xff] }
  0x72   :  { %1243 = vmatpush1.bf16.msra.mxu0 %v1242_v55  ;;  %v224_v55 = vld [vmem:[#allocation5 + $0x500] sm:$0xff]  ;;  %v1468_v31 = vpack.c.bf16 %v255_v24, %v251_v23  ;;  %v259_v35 = vld [vmem:[#allocation5 + $0x618] sm:$0xff]  ;;  %v265_v45 = vld [vmem:[#allocation5 + $0x648] sm:$0xff] }
  0x73   :  { %1435 = vmatpush1.bf16.msra.mxu1 %v1434_v56  ;;  %1245 = vmatprep.subr.bf16.mxu0 %v1244_v57  ;;  %v228_v56 = vld [vmem:[#allocation5 + $0x520] sm:$0xff]  ;;  %v226_v57 = vld [vmem:[#allocation5 + $0x510] sm:$0xff]  ;;  %v263_v36 = vld [vmem:[#allocation5 + $0x638] sm:$0xff] }
  0x74   :  { %1437 = vmatprep.subr.bf16.mxu1 %v1436_v61  ;;  %v237_v61 = vld [vmem:[#allocation5 + $0x568] sm:$0xff]  ;;  %v1266_v0 = vpack.c.bf16 %v228_v56, %v224_v55  ;;  %v1458_v1 = vpack.c.bf16 %v230_v59, %v226_v57  ;;  %v1472_v43 = vpack.c.bf16 %v263_v36, %v259_v35  ;;  %v267_v47 = vld [vmem:[#allocation5 + $0x658] sm:$0xff]  ;;  %v270_v56 = vld [vmem:[#allocation5 + $0x670] sm:$0xff] }
  0x75   :  { %v1268_v2 = vpack.c.bf16 %v237_v61, %v233_v60  ;;  %v271_v48 = vld [vmem:[#allocation5 + $0x678] sm:$0xff]  ;;  %v273_v57 = vld [vmem:[#allocation5 + $0x688] sm:$0xff]  ;;  %v288_v24 = vld [vmem:[#allocation5 + $0x700] sm:$0xff] }
  0x76   :  { %1247 = vmatpush1.bf16.msra.mxu0 %v1246_v3  ;;  %v232_v3 = vld [vmem:[#allocation5 + $0x540] sm:$0xff]  ;;  %v1476_v55 = vpack.c.bf16 %v271_v48, %v267_v47  ;;  %v275_v59 = vld [vmem:[#allocation5 + $0x698] sm:$0xff] }
  0x77   :  { %1439 = vmatpush1.bf16.msra.mxu1 %v1438_v4  ;;  %1249 = vmatprep.subr.bf16.mxu0 %v1248_v5  ;;  %v236_v4 = vld [vmem:[#allocation5 + $0x560] sm:$0xff]  ;;  %v234_v5 = vld [vmem:[#allocation5 + $0x550] sm:$0xff]  ;;  %v279_v60 = vld [vmem:[#allocation5 + $0x6b8] sm:$0xff] }
  0x78   :  { %1441 = vmatprep.subr.bf16.mxu1 %v1440_v9  ;;  %v245_v9 = vld [vmem:[#allocation5 + $0x5a8] sm:$0xff]  ;;  %v1270_v12 = vpack.c.bf16 %v236_v4, %v232_v3  ;;  %v1462_v14 = vpack.c.bf16 %v238_v7, %v234_v5  ;;  %v1480_v3 = vpack.c.bf16 %v279_v60, %v275_v59  ;;  %v278_v4 = vld [vmem:[#allocation5 + $0x6b0] sm:$0xff]  ;;  %v283_v7 = vld [vmem:[#allocation5 + $0x6d8] sm:$0xff] }
  0x79   :  { %535 = vmatmul.mubr.f32.vlgmr.msra.gmra.mrb[0].mxu0 %v58_v15  ;;  %v281_v5 = vld [vmem:[#allocation5 + $0x6c8] sm:$0xff]  ;;  %v295_v20 = vld [vmem:[#allocation5 + $0x738] sm:$0xff]  ;;  %v296_v36 = vld [vmem:[#allocation5 + $0x740] sm:$0xff] }
  0x7a   :  { %1251 = vmatpush1.bf16.msra.mxu0 %v1250_v16  ;;  %748 = vmatmul.mubr.f32.vlgmr.msra.gmra.mrb[0].mxu1 %v58_v15  ;;  %v1272_v15 = vpack.c.bf16 %v245_v9, %v241_v8  ;;  %v244_v16 = vld [vmem:[#allocation5 + $0x5a0] sm:$0xff]  ;;  %v287_v8 = vld [vmem:[#allocation5 + $0x6f8] sm:$0xff] }
  0x7b   :  { %1443 = vmatpush1.bf16.msra.mxu1 %v1442_v17  ;;  %1253 = vmatprep.subr.bf16.mxu0 %v1252_v18  ;;  %v242_v17 = vld [vmem:[#allocation5 + $0x590] sm:$0xff]  ;;  %v1274_v25 = vpack.c.bf16 %v244_v16, %v240_v13  ;;  %v284_v13 = vld [vmem:[#allocation5 + $0x6e0] sm:$0xff] }
  0x7c   :  { %1445 = vmatprep.subr.bf16.mxu1 %v1444_v22  ;;  %v246_v18 = vld [vmem:[#allocation5 + $0x5b0] sm:$0xff]  ;;  %v61_v22 = vld [vmem:[#allocation3 + $0x18] sm:$0xff]  ;;  %v304_v48 = vld [vmem:[#allocation5 + $0x780] sm:$0xff] }
  0x7d   :  { %605 = vmatprep.mubr.f32.mxu0 %v61_v22  ;;  %818 = vmatprep.mubr.f32.mxu1 %v61_v22  ;;  %v1466_v26 = vpack.c.bf16 %v246_v18, %v242_v17  ;;  %v286_v16 = vld [vmem:[#allocation5 + $0x6f0] sm:$0xff]  ;;  %v289_v17 = vld [vmem:[#allocation5 + $0x708] sm:$0xff]  ;;  %v312_v60 = vld [vmem:[#allocation5 + $0x7c0] sm:$0xff] }
  0x7e   :  { %1255 = vmatpush1.bf16.msra.mxu0 %v1254_v28  ;;  %v248_v28 = vld [vmem:[#allocation5 + $0x5c0] sm:$0xff]  ;;  %v293_v18 = vld [vmem:[#allocation5 + $0x728] sm:$0xff] }
  0x7f   :  { %1447 = vmatpush1.bf16.msra.mxu1 %v1446_v29  ;;  %1257 = vmatprep.subr.bf16.mxu0 %v1256_v30  ;;  %v252_v29 = vld [vmem:[#allocation5 + $0x5e0] sm:$0xff]  ;;  %v250_v30 = vld [vmem:[#allocation5 + $0x5d0] sm:$0xff]  ;;  %v1296_v23 = vpack.c.bf16 %v293_v18, %v289_v17 }
  0x80   :  { %1449 = vmatprep.subr.bf16.mxu1 %v1448_v34  ;;  %v261_v34 = vld [vmem:[#allocation5 + $0x628] sm:$0xff]  ;;  %v1278_v37 = vpack.c.bf16 %v252_v29, %v248_v28  ;;  %v1470_v38 = vpack.c.bf16 %v254_v32, %v250_v30  ;;  %v294_v28 = vld [vmem:[#allocation5 + $0x730] sm:$0xff]  ;;  %v303_v32 = vld [vmem:[#allocation5 + $0x778] sm:$0xff] }
  0x81   :  { %v1280_v39 = vpack.c.bf16 %v261_v34, %v257_v33  ;;  %v297_v29 = vld [vmem:[#allocation5 + $0x748] sm:$0xff]  ;;  %v60_v17 = vld [vmem:[#allocation3 + $0x10] sm:$0xff] }
  0x82   :  { %1259 = vmatpush1.bf16.msra.mxu0 %v1258_v40  ;;  %v256_v40 = vld [vmem:[#allocation5 + $0x600] sm:$0xff]  ;;  %v301_v30 = vld [vmem:[#allocation5 + $0x768] sm:$0xff] }
  0x83   :  { %1451 = vmatpush1.bf16.msra.mxu1 %v1450_v41  ;;  %1261 = vmatprep.subr.bf16.mxu0 %v1260_v42  ;;  %v260_v41 = vld [vmem:[#allocation5 + $0x620] sm:$0xff]  ;;  %v258_v42 = vld [vmem:[#allocation5 + $0x610] sm:$0xff]  ;;  %v1300_v35 = vpack.c.bf16 %v301_v30, %v297_v29  ;;  %v343_v29 = vld [vmem:[#allocation5 + $0x8b8] sm:$0xff] }
  0x84   :  { %1453 = vmatprep.subr.bf16.mxu1 %v1452_v46  ;;  %v269_v46 = vld [vmem:[#allocation5 + $0x668] sm:$0xff]  ;;  %v1282_v49 = vpack.c.bf16 %v260_v41, %v256_v40  ;;  %v1474_v50 = vpack.c.bf16 %v262_v44, %v258_v42  ;;  %v302_v40 = vld [vmem:[#allocation5 + $0x770] sm:$0xff]  ;;  %v311_v44 = vld [vmem:[#allocation5 + $0x7b8] sm:$0xff] }
  0x85   :  { %v1284_v51 = vpack.c.bf16 %v269_v46, %v265_v45  ;;  %v305_v41 = vld [vmem:[#allocation5 + $0x788] sm:$0xff]  ;;  %v63_v30 = vld [vmem:[#allocation3 + $0x28] sm:$0xff] }
  0x86   :  { %1263 = vmatpush1.bf16.msra.mxu0 %v1262_v52  ;;  %v264_v52 = vld [vmem:[#allocation5 + $0x640] sm:$0xff]  ;;  %v309_v42 = vld [vmem:[#allocation5 + $0x7a8] sm:$0xff] }
  0x87   :  { %1455 = vmatpush1.bf16.msra.mxu1 %v1454_v53  ;;  %1265 = vmatprep.subr.bf16.mxu0 %v1264_v54  ;;  %v268_v53 = vld [vmem:[#allocation5 + $0x660] sm:$0xff]  ;;  %v266_v54 = vld [vmem:[#allocation5 + $0x650] sm:$0xff]  ;;  %v1304_v47 = vpack.c.bf16 %v309_v42, %v305_v41  ;;  %v347_v41 = vld [vmem:[#allocation5 + $0x8d8] sm:$0xff] }
  0x88   :  { %1457 = vmatprep.subr.bf16.mxu1 %v1456_v58  ;;  %v277_v58 = vld [vmem:[#allocation5 + $0x6a8] sm:$0xff]  ;;  %v1286_v61 = vpack.c.bf16 %v268_v53, %v264_v52  ;;  %v1478_v62 = vpack.c.bf16 %v270_v56, %v266_v54  ;;  %v310_v52 = vld [vmem:[#allocation5 + $0x7b0] sm:$0xff]  ;;  %v319_v56 = vld [vmem:[#allocation5 + $0x7f8] sm:$0xff] }
  0x89   :  { %v1288_v63 = vpack.c.bf16 %v277_v58, %v273_v57  ;;  %v313_v53 = vld [vmem:[#allocation5 + $0x7c8] sm:$0xff]  ;;  %v351_v42 = vld [vmem:[#allocation5 + $0x8f8] sm:$0xff] }
  0x8a   :  { %1267 = vmatpush1.bf16.msra.mxu0 %v1266_v0  ;;  %v272_v0 = vld [vmem:[#allocation5 + $0x680] sm:$0xff]  ;;  %v317_v54 = vld [vmem:[#allocation5 + $0x7e8] sm:$0xff] }
  0x8b   :  { %1459 = vmatpush1.bf16.msra.mxu1 %v1458_v1  ;;  %1269 = vmatprep.subr.bf16.mxu0 %v1268_v2  ;;  %v276_v1 = vld [vmem:[#allocation5 + $0x6a0] sm:$0xff]  ;;  %v274_v2 = vld [vmem:[#allocation5 + $0x690] sm:$0xff]  ;;  %v1308_v59 = vpack.c.bf16 %v317_v54, %v313_v53  ;;  %v355_v53 = vld [vmem:[#allocation5 + $0x918] sm:$0xff] }
  0x8c   :  { %1461 = vmatprep.subr.bf16.mxu1 %v1460_v6  ;;  %v285_v6 = vld [vmem:[#allocation5 + $0x6e8] sm:$0xff]  ;;  %v1290_v9 = vpack.c.bf16 %v276_v1, %v272_v0  ;;  %v1482_v10 = vpack.c.bf16 %v278_v4, %v274_v2  ;;  %v318_v0 = vld [vmem:[#allocation5 + $0x7f0] sm:$0xff]  ;;  %v327_v4 = vld [vmem:[#allocation5 + $0x838] sm:$0xff] }
  0x8d   :  { %v1292_v11 = vpack.c.bf16 %v285_v6, %v281_v5  ;;  %v321_v1 = vld [vmem:[#allocation5 + $0x808] sm:$0xff]  ;;  %v359_v54 = vld [vmem:[#allocation5 + $0x938] sm:$0xff] }
  0x8e   :  { %1271 = vmatpush1.bf16.msra.mxu0 %v1270_v12  ;;  %v280_v12 = vld [vmem:[#allocation5 + $0x6c0] sm:$0xff]  ;;  %v325_v2 = vld [vmem:[#allocation5 + $0x828] sm:$0xff] }
  0x8f   :  { %1463 = vmatpush1.bf16.msra.mxu1 %v1462_v14  ;;  %1273 = vmatprep.subr.bf16.mxu0 %v1272_v15  ;;  %v282_v14 = vld [vmem:[#allocation5 + $0x6d0] sm:$0xff]  ;;  %v1484_v15 = vpack.c.bf16 %v287_v8, %v283_v7  ;;  %v1294_v21 = vpack.c.bf16 %v284_v13, %v280_v12  ;;  %v1312_v7 = vpack.c.bf16 %v325_v2, %v321_v1  ;;  %v320_v8 = vld [vmem:[#allocation5 + $0x800] sm:$0xff]  ;;  %v329_v13 = vld [vmem:[#allocation5 + $0x848] sm:$0xff] }
  0x90   :  { %1465 = vmatprep.subr.bf16.mxu1 %v1464_v19  ;;  %v291_v19 = vld [vmem:[#allocation5 + $0x718] sm:$0xff]  ;;  %v1486_v22 = vpack.c.bf16 %v286_v16, %v282_v14  ;;  %v326_v12 = vld [vmem:[#allocation5 + $0x830] sm:$0xff]  ;;  %v333_v14 = vld [vmem:[#allocation5 + $0x868] sm:$0xff] }
  0x91   :  { %v335_v16 = vld [vmem:[#allocation5 + $0x878] sm:$0xff] }
  0x92   :  { %1275 = vmatpush1.bf16.msra.mxu0 %v1274_v25  ;;  %v292_v25 = vld [vmem:[#allocation5 + $0x720] sm:$0xff]  ;;  %v363_v1 = vld [vmem:[#allocation5 + $0x958] sm:$0xff] }
  0x93   :  { %1467 = vmatpush1.bf16.msra.mxu1 %v1466_v26  ;;  %1277 = vmatprep.subr.bf16.mxu0 %v1276_v27  ;;  %v290_v26 = vld [vmem:[#allocation5 + $0x710] sm:$0xff]  ;;  %v1488_v27 = vpack.c.bf16 %v295_v20, %v291_v19  ;;  %v1298_v33 = vpack.c.bf16 %v292_v25, %v288_v24  ;;  %v1316_v20 = vpack.c.bf16 %v333_v14, %v329_v13  ;;  %v367_v2 = vld [vmem:[#allocation5 + $0x978] sm:$0xff] }
  0x94   :  { %1469 = vmatprep.subr.bf16.mxu1 %v1468_v31  ;;  %v299_v31 = vld [vmem:[#allocation5 + $0x758] sm:$0xff]  ;;  %v1490_v34 = vpack.c.bf16 %v294_v28, %v290_v26  ;;  %v334_v25 = vld [vmem:[#allocation5 + $0x870] sm:$0xff]  ;;  %v337_v26 = vld [vmem:[#allocation5 + $0x888] sm:$0xff] }
  0x95   :  { %v339_v28 = vld [vmem:[#allocation5 + $0x898] sm:$0xff] }
  0x96   :  { %1279 = vmatpush1.bf16.msra.mxu0 %v1278_v37  ;;  %v300_v37 = vld [vmem:[#allocation5 + $0x760] sm:$0xff]  ;;  %v371_v13 = vld [vmem:[#allocation5 + $0x998] sm:$0xff] }
  0x97   :  { %1471 = vmatpush1.bf16.msra.mxu1 %v1470_v38  ;;  %1281 = vmatprep.subr.bf16.mxu0 %v1280_v39  ;;  %v298_v38 = vld [vmem:[#allocation5 + $0x750] sm:$0xff]  ;;  %v1492_v39 = vpack.c.bf16 %v303_v32, %v299_v31  ;;  %v1302_v45 = vpack.c.bf16 %v300_v37, %v296_v36  ;;  %v1512_v37 = vpack.c.bf16 %v343_v29, %v339_v28  ;;  %v375_v14 = vld [vmem:[#allocation5 + $0x9b8] sm:$0xff] }
  0x98   :  { %1473 = vmatprep.subr.bf16.mxu1 %v1472_v43  ;;  %v307_v43 = vld [vmem:[#allocation5 + $0x798] sm:$0xff]  ;;  %v1494_v46 = vpack.c.bf16 %v302_v40, %v298_v38  ;;  %v338_v36 = vld [vmem:[#allocation5 + $0x890] sm:$0xff]  ;;  %v349_v40 = vld [vmem:[#allocation5 + $0x8e8] sm:$0xff] }
  0x99   :  { %v342_v38 = vld [vmem:[#allocation5 + $0x8b0] sm:$0xff] }
  0x9a   :  { %1283 = vmatpush1.bf16.msra.mxu0 %v1282_v49  ;;  %v308_v49 = vld [vmem:[#allocation5 + $0x7a0] sm:$0xff] }
  0x9b   :  { %1475 = vmatpush1.bf16.msra.mxu1 %v1474_v50  ;;  %1285 = vmatprep.subr.bf16.mxu0 %v1284_v51  ;;  %v306_v50 = vld [vmem:[#allocation5 + $0x790] sm:$0xff]  ;;  %v1496_v51 = vpack.c.bf16 %v311_v44, %v307_v43  ;;  %v1306_v57 = vpack.c.bf16 %v308_v49, %v304_v48  ;;  %v1514_v44 = vpack.c.bf16 %v342_v38, %v338_v36  ;;  %v389_v36 = vld [vmem:[#allocation5 + $0xa28] sm:$0xff]  ;;  %v391_v38 = vld [vmem:[#allocation5 + $0xa38] sm:$0xff] }
  0x9c   :  { %1477 = vmatprep.subr.bf16.mxu1 %v1476_v55  ;;  %v315_v55 = vld [vmem:[#allocation5 + $0x7d8] sm:$0xff]  ;;  %v1498_v58 = vpack.c.bf16 %v310_v52, %v306_v50  ;;  %v346_v48 = vld [vmem:[#allocation5 + $0x8d0] sm:$0xff]  ;;  %v1516_v49 = vpack.c.bf16 %v351_v42, %v347_v41  ;;  %v357_v52 = vld [vmem:[#allocation5 + $0x928] sm:$0xff] }
  0x9d   :  { %v350_v50 = vld [vmem:[#allocation5 + $0x8f0] sm:$0xff]  ;;  %v384_v42 = vld [vmem:[#allocation5 + $0xa00] sm:$0xff] }
  0x9e   :  { %1287 = vmatpush1.bf16.msra.mxu0 %v1286_v61  ;;  %v316_v61 = vld [vmem:[#allocation5 + $0x7e0] sm:$0xff] }
  0x9f   :  { %1479 = vmatpush1.bf16.msra.mxu1 %v1478_v62  ;;  %1289 = vmatprep.subr.bf16.mxu0 %v1288_v63  ;;  %v314_v62 = vld [vmem:[#allocation5 + $0x7d0] sm:$0xff]  ;;  %v1500_v63 = vpack.c.bf16 %v319_v56, %v315_v55  ;;  %v1310_v5 = vpack.c.bf16 %v316_v61, %v312_v60  ;;  %v1518_v56 = vpack.c.bf16 %v350_v50, %v346_v48  ;;  %v397_v48 = vld [vmem:[#allocation5 + $0xa68] sm:$0xff]  ;;  %v399_v50 = vld [vmem:[#allocation5 + $0xa78] sm:$0xff] }
  0xa0   :  { %1481 = vmatprep.subr.bf16.mxu1 %v1480_v3  ;;  %v323_v3 = vld [vmem:[#allocation5 + $0x818] sm:$0xff]  ;;  %v1502_v6 = vpack.c.bf16 %v318_v0, %v314_v62  ;;  %v354_v60 = vld [vmem:[#allocation5 + $0x910] sm:$0xff]  ;;  %v1520_v61 = vpack.c.bf16 %v359_v54, %v355_v53  ;;  %v365_v0 = vld [vmem:[#allocation5 + $0x968] sm:$0xff] }
  0xa1   :  { %v358_v62 = vld [vmem:[#allocation5 + $0x930] sm:$0xff]  ;;  %v392_v54 = vld [vmem:[#allocation5 + $0xa40] sm:$0xff] }
  0xa2   :  { %1291 = vmatpush1.bf16.msra.mxu0 %v1290_v9  ;;  %v324_v9 = vld [vmem:[#allocation5 + $0x820] sm:$0xff] }
  0xa3   :  { %1483 = vmatpush1.bf16.msra.mxu1 %v1482_v10  ;;  %1293 = vmatprep.subr.bf16.mxu0 %v1292_v11  ;;  %v322_v10 = vld [vmem:[#allocation5 + $0x810] sm:$0xff]  ;;  %v1504_v11 = vpack.c.bf16 %v327_v4, %v323_v3  ;;  %v1314_v18 = vpack.c.bf16 %v324_v9, %v320_v8  ;;  %v1522_v4 = vpack.c.bf16 %v358_v62, %v354_v60  ;;  %v405_v60 = vld [vmem:[#allocation5 + $0xaa8] sm:$0xff]  ;;  %v407_v62 = vld [vmem:[#allocation5 + $0xab8] sm:$0xff] }
  0xa4   :  { %1485 = vmatprep.subr.bf16.mxu1 %v1484_v15  ;;  %v331_v15 = vld [vmem:[#allocation5 + $0x858] sm:$0xff]  ;;  %v1506_v19 = vpack.c.bf16 %v326_v12, %v322_v10  ;;  %v362_v8 = vld [vmem:[#allocation5 + $0x950] sm:$0xff]  ;;  %v1524_v9 = vpack.c.bf16 %v367_v2, %v363_v1  ;;  %v373_v12 = vld [vmem:[#allocation5 + $0x9a8] sm:$0xff] }
  0xa5   :  { %v1508_v24 = vpack.c.bf16 %v335_v16, %v331_v15  ;;  %v366_v10 = vld [vmem:[#allocation5 + $0x970] sm:$0xff]  ;;  %v400_v2 = vld [vmem:[#allocation5 + $0xa80] sm:$0xff] }
  0xa6   :  { %1295 = vmatpush1.bf16.msra.mxu0 %v1294_v21  ;;  %v328_v21 = vld [vmem:[#allocation5 + $0x840] sm:$0xff]  ;;  %v1526_v16 = vpack.c.bf16 %v366_v10, %v362_v8  ;;  %v413_v8 = vld [vmem:[#allocation5 + $0xae8] sm:$0xff]  ;;  %v415_v10 = vld [vmem:[#allocation5 + $0xaf8] sm:$0xff] }
  0xa7   :  { %1487 = vmatpush1.bf16.msra.mxu1 %v1486_v22  ;;  %1297 = vmatprep.subr.bf16.mxu0 %v1296_v23  ;;  %v332_v22 = vld [vmem:[#allocation5 + $0x860] sm:$0xff]  ;;  %v330_v23 = vld [vmem:[#allocation5 + $0x850] sm:$0xff] }
  0xa8   :  { %1489 = vmatprep.subr.bf16.mxu1 %v1488_v27  ;;  %v341_v27 = vld [vmem:[#allocation5 + $0x8a8] sm:$0xff]  ;;  %v1318_v31 = vpack.c.bf16 %v332_v22, %v328_v21  ;;  %v1510_v32 = vpack.c.bf16 %v334_v25, %v330_v23  ;;  %v1528_v21 = vpack.c.bf16 %v375_v14, %v371_v13  ;;  %v374_v22 = vld [vmem:[#allocation5 + $0x9b0] sm:$0xff]  ;;  %v379_v25 = vld [vmem:[#allocation5 + $0x9d8] sm:$0xff] }
  0xa9   :  { %v377_v23 = vld [vmem:[#allocation5 + $0x9c8] sm:$0xff]  ;;  %v408_v14 = vld [vmem:[#allocation5 + $0xac0] sm:$0xff] }
  0xaa   :  { %1299 = vmatpush1.bf16.msra.mxu0 %v1298_v33  ;;  %v1320_v33 = vpack.c.bf16 %v341_v27, %v337_v26  ;;  %v383_v26 = vld [vmem:[#allocation5 + $0x9f8] sm:$0xff] }
  0xab   :  { %1491 = vmatpush1.bf16.msra.mxu1 %v1490_v34  ;;  %1301 = vmatprep.subr.bf16.mxu0 %v1300_v35  ;;  %v336_v34 = vld [vmem:[#allocation5 + $0x880] sm:$0xff] }
  0xac   :  { %1493 = vmatprep.subr.bf16.mxu1 %v1492_v39  ;;  %v340_v35 = vld [vmem:[#allocation5 + $0x8a0] sm:$0xff]  ;;  %v345_v39 = vld [vmem:[#allocation5 + $0x8c8] sm:$0xff] }
  0xad   :  { %v1322_v43 = vpack.c.bf16 %v340_v35, %v336_v34  ;;  %v382_v34 = vld [vmem:[#allocation5 + $0x9f0] sm:$0xff]  ;;  %v385_v35 = vld [vmem:[#allocation5 + $0xa08] sm:$0xff] }
  0xae   :  { %1303 = vmatpush1.bf16.msra.mxu0 %v1302_v45  ;;  %v1324_v45 = vpack.c.bf16 %v349_v40, %v345_v39  ;;  %v1344_v41 = vpack.c.bf16 %v389_v36, %v385_v35 }
  0xaf   :  { %1495 = vmatpush1.bf16.msra.mxu1 %v1494_v46  ;;  %1305 = vmatprep.subr.bf16.mxu0 %v1304_v47  ;;  %v344_v46 = vld [vmem:[#allocation5 + $0x8c0] sm:$0xff] }
  0xb0   :  { %1497 = vmatprep.subr.bf16.mxu1 %v1496_v51  ;;  %v348_v47 = vld [vmem:[#allocation5 + $0x8e0] sm:$0xff]  ;;  %v353_v51 = vld [vmem:[#allocation5 + $0x908] sm:$0xff] }
  0xb1   :  { %v1326_v55 = vpack.c.bf16 %v348_v47, %v344_v46  ;;  %v390_v46 = vld [vmem:[#allocation5 + $0xa30] sm:$0xff]  ;;  %v393_v47 = vld [vmem:[#allocation5 + $0xa48] sm:$0xff] }
  0xb2   :  { %1307 = vmatpush1.bf16.msra.mxu0 %v1306_v57  ;;  %v1328_v57 = vpack.c.bf16 %v357_v52, %v353_v51  ;;  %v1348_v53 = vpack.c.bf16 %v397_v48, %v393_v47 }
  0xb3   :  { %1499 = vmatpush1.bf16.msra.mxu1 %v1498_v58  ;;  %1309 = vmatprep.subr.bf16.mxu0 %v1308_v59  ;;  %v352_v58 = vld [vmem:[#allocation5 + $0x900] sm:$0xff] }
  0xb4   :  { %1501 = vmatprep.subr.bf16.mxu1 %v1500_v63  ;;  %v356_v59 = vld [vmem:[#allocation5 + $0x920] sm:$0xff]  ;;  %v361_v63 = vld [vmem:[#allocation5 + $0x948] sm:$0xff] }
  0xb5   :  { %v1330_v3 = vpack.c.bf16 %v356_v59, %v352_v58  ;;  %v398_v58 = vld [vmem:[#allocation5 + $0xa70] sm:$0xff]  ;;  %v401_v59 = vld [vmem:[#allocation5 + $0xa88] sm:$0xff] }
  0xb6   :  { %1311 = vmatpush1.bf16.msra.mxu0 %v1310_v5  ;;  %v1332_v5 = vpack.c.bf16 %v365_v0, %v361_v63  ;;  %v1352_v1 = vpack.c.bf16 %v405_v60, %v401_v59 }
  0xb7   :  { %1503 = vmatpush1.bf16.msra.mxu1 %v1502_v6  ;;  %1313 = vmatprep.subr.bf16.mxu0 %v1312_v7  ;;  %v360_v6 = vld [vmem:[#allocation5 + $0x940] sm:$0xff] }
  0xb8   :  { %1505 = vmatprep.subr.bf16.mxu1 %v1504_v11  ;;  %v364_v7 = vld [vmem:[#allocation5 + $0x960] sm:$0xff]  ;;  %v369_v11 = vld [vmem:[#allocation5 + $0x988] sm:$0xff] }
  0xb9   :  { %606 = vmatmul.mubr.f32.vlgmr.msra.gmra.mrb[0].mxu0 %v60_v17  ;;  %v1334_v15 = vpack.c.bf16 %v364_v7, %v360_v6  ;;  %v406_v6 = vld [vmem:[#allocation5 + $0xab0] sm:$0xff]  ;;  %v409_v7 = vld [vmem:[#allocation5 + $0xac8] sm:$0xff] }
  0xba   :  { %1315 = vmatpush1.bf16.msra.mxu0 %v1314_v18  ;;  %819 = vmatmul.mubr.f32.vlgmr.msra.gmra.mrb[0].mxu1 %v60_v17  ;;  %v1336_v17 = vpack.c.bf16 %v373_v12, %v369_v11  ;;  %v368_v18 = vld [vmem:[#allocation5 + $0x980] sm:$0xff]  ;;  %v1356_v13 = vpack.c.bf16 %v413_v8, %v409_v7 }
  0xbb   :  { %1507 = vmatpush1.bf16.msra.mxu1 %v1506_v19  ;;  %1317 = vmatprep.subr.bf16.mxu0 %v1316_v20  ;;  %v372_v19 = vld [vmem:[#allocation5 + $0x9a0] sm:$0xff]  ;;  %v370_v20 = vld [vmem:[#allocation5 + $0x990] sm:$0xff] }
  0xbc   :  { %1509 = vmatprep.subr.bf16.mxu1 %v1508_v24  ;;  %676 = vmatprep.mubr.f32.mxu0 %v63_v30  ;;  %v381_v24 = vld [vmem:[#allocation5 + $0x9e8] sm:$0xff]  ;;  %v1338_v27 = vpack.c.bf16 %v372_v19, %v368_v18  ;;  %v1530_v28 = vpack.c.bf16 %v374_v22, %v370_v20  ;;  %v414_v18 = vld [vmem:[#allocation5 + $0xaf0] sm:$0xff]  ;;  %v423_v22 = vld [vmem:[#allocation5 + $0xb38] sm:$0xff] }
  0xbd   :  { %889 = vmatprep.mubr.f32.mxu1 %v63_v30  ;;  %v1340_v29 = vpack.c.bf16 %v381_v24, %v377_v23  ;;  %v376_v30 = vld [vmem:[#allocation5 + $0x9c0] sm:$0xff]  ;;  %v417_v19 = vld [vmem:[#allocation5 + $0xb08] sm:$0xff] }
  0xbe   :  { %1319 = vmatpush1.bf16.msra.mxu0 %v1318_v31  ;;  %v380_v31 = vld [vmem:[#allocation5 + $0x9e0] sm:$0xff]  ;;  %v421_v20 = vld [vmem:[#allocation5 + $0xb28] sm:$0xff] }
  0xbf   :  { %1511 = vmatpush1.bf16.msra.mxu1 %v1510_v32  ;;  %1321 = vmatprep.subr.bf16.mxu0 %v1320_v33  ;;  %v378_v32 = vld [vmem:[#allocation5 + $0x9d0] sm:$0xff]  ;;  %v1532_v33 = vpack.c.bf16 %v383_v26, %v379_v25  ;;  %v1342_v39 = vpack.c.bf16 %v380_v31, %v376_v30  ;;  %v1360_v25 = vpack.c.bf16 %v421_v20, %v417_v19  ;;  %v416_v26 = vld [vmem:[#allocation5 + $0xb00] sm:$0xff]  ;;  %v425_v31 = vld [vmem:[#allocation5 + $0xb48] sm:$0xff] }
  0xc0   :  { %1513 = vmatprep.subr.bf16.mxu1 %v1512_v37  ;;  %v387_v37 = vld [vmem:[#allocation5 + $0xa18] sm:$0xff]  ;;  %v1534_v40 = vpack.c.bf16 %v382_v34, %v378_v32  ;;  %v422_v30 = vld [vmem:[#allocation5 + $0xb30] sm:$0xff]  ;;  %v429_v32 = vld [vmem:[#allocation5 + $0xb68] sm:$0xff] }
  0xc1   :  { %v431_v34 = vld [vmem:[#allocation5 + $0xb78] sm:$0xff]  ;;  %v62_v19 = vld [vmem:[#allocation3 + $0x20] sm:$0xff] }
  0xc2   :  { %1323 = vmatpush1.bf16.msra.mxu0 %v1322_v43  ;;  %v388_v43 = vld [vmem:[#allocation5 + $0xa20] sm:$0xff] }
  0xc3   :  { %1515 = vmatpush1.bf16.msra.mxu1 %v1514_v44  ;;  %1325 = vmatprep.subr.bf16.mxu0 %v1324_v45  ;;  %v386_v44 = vld [vmem:[#allocation5 + $0xa10] sm:$0xff]  ;;  %v1536_v45 = vpack.c.bf16 %v391_v38, %v387_v37  ;;  %v1346_v51 = vpack.c.bf16 %v388_v43, %v384_v42  ;;  %v1364_v37 = vpack.c.bf16 %v429_v32, %v425_v31  ;;  %v424_v38 = vld [vmem:[#allocation5 + $0xb40] sm:$0xff]  ;;  %v433_v43 = vld [vmem:[#allocation5 + $0xb88] sm:$0xff] }
  0xc4   :  { %1517 = vmatprep.subr.bf16.mxu1 %v1516_v49  ;;  %v395_v49 = vld [vmem:[#allocation5 + $0xa58] sm:$0xff]  ;;  %v1538_v52 = vpack.c.bf16 %v390_v46, %v386_v44  ;;  %v430_v42 = vld [vmem:[#allocation5 + $0xb70] sm:$0xff]  ;;  %v437_v44 = vld [vmem:[#allocation5 + $0xba8] sm:$0xff] }
  0xc5   :  { %v439_v46 = vld [vmem:[#allocation5 + $0xbb8] sm:$0xff] }
  0xc6   :  { %1327 = vmatpush1.bf16.msra.mxu0 %v1326_v55  ;;  %v396_v55 = vld [vmem:[#allocation5 + $0xa60] sm:$0xff]  ;;  %v953_v31 = vld [vmem:[%s1991_s3 + $0x1a8] sm:$0xff] }
  0xc7   :  { %1519 = vmatpush1.bf16.msra.mxu1 %v1518_v56  ;;  %1329 = vmatprep.subr.bf16.mxu0 %v1328_v57  ;;  %v394_v56 = vld [vmem:[#allocation5 + $0xa50] sm:$0xff]  ;;  %v1540_v57 = vpack.c.bf16 %v399_v50, %v395_v49  ;;  %v1350_v63 = vpack.c.bf16 %v396_v55, %v392_v54  ;;  %v1368_v49 = vpack.c.bf16 %v437_v44, %v433_v43  ;;  %v432_v50 = vld [vmem:[#allocation5 + $0xb80] sm:$0xff]  ;;  %v441_v55 = vld [vmem:[#allocation5 + $0xbc8] sm:$0xff] }
  0xc8   :  { %1521 = vmatprep.subr.bf16.mxu1 %v1520_v61  ;;  %v403_v61 = vld [vmem:[#allocation5 + $0xa98] sm:$0xff]  ;;  %v1542_v0 = vpack.c.bf16 %v398_v58, %v394_v56  ;;  %v438_v54 = vld [vmem:[#allocation5 + $0xbb0] sm:$0xff]  ;;  %v445_v56 = vld [vmem:[#allocation5 + $0xbe8] sm:$0xff] }
  0xc9   :  { %v447_v58 = vld [vmem:[#allocation5 + $0xbf8] sm:$0xff]  ;;  %v955_v43 = vld [vmem:[%s1991_s3 + $0x1b8] sm:$0xff] }
  0xca   :  { %1331 = vmatpush1.bf16.msra.mxu0 %v1330_v3  ;;  %v404_v3 = vld [vmem:[#allocation5 + $0xaa0] sm:$0xff] }
  0xcb   :  { %1523 = vmatpush1.bf16.msra.mxu1 %v1522_v4  ;;  %1333 = vmatprep.subr.bf16.mxu0 %v1332_v5  ;;  %v402_v4 = vld [vmem:[#allocation5 + $0xa90] sm:$0xff]  ;;  %v1544_v5 = vpack.c.bf16 %v407_v62, %v403_v61  ;;  %v1354_v11 = vpack.c.bf16 %v404_v3, %v400_v2  ;;  %v1372_v61 = vpack.c.bf16 %v445_v56, %v441_v55  ;;  %v440_v62 = vld [vmem:[#allocation5 + $0xbc0] sm:$0xff]  ;;  %v957_v55 = vld [vmem:[%s1991_s3 + $0x1c8] sm:$0xff] }
  0xcc   :  { %1525 = vmatprep.subr.bf16.mxu1 %v1524_v9  ;;  %v411_v9 = vld [vmem:[#allocation5 + $0xad8] sm:$0xff]  ;;  %v1546_v12 = vpack.c.bf16 %v406_v6, %v402_v4  ;;  %v446_v2 = vld [vmem:[#allocation5 + $0xbf0] sm:$0xff] }
  0xcd   :  { %v916_v3 = vld [vmem:[%s1991_s3 + $0x80] sm:$0xff]  ;;  %v917_v4 = vld [vmem:[%s1991_s3 + $0x88] sm:$0xff] }
  0xce   :  { %1335 = vmatpush1.bf16.msra.mxu0 %v1334_v15  ;;  %v412_v15 = vld [vmem:[#allocation5 + $0xae0] sm:$0xff]  ;;  %v949_v6 = vld [vmem:[%s1991_s3 + $0x188] sm:$0xff] }
  0xcf   :  { %1527 = vmatpush1.bf16.msra.mxu1 %v1526_v16  ;;  %1337 = vmatprep.subr.bf16.mxu0 %v1336_v17  ;;  %v410_v16 = vld [vmem:[#allocation5 + $0xad0] sm:$0xff]  ;;  %v1548_v17 = vpack.c.bf16 %v415_v10, %v411_v9  ;;  %v1358_v23 = vpack.c.bf16 %v412_v15, %v408_v14  ;;  %v1568_v9 = vpack.c.bf16 %v917_v4, %v916_v3  ;;  %v933_v14 = vld [vmem:[%s1991_s3 + $0x108] sm:$0xff]  ;;  %v918_v15 = vld [vmem:[%s1991_s3 + $0x90] sm:$0xff] }
  0xd0   :  { %1529 = vmatprep.subr.bf16.mxu1 %v1528_v21  ;;  %v419_v21 = vld [vmem:[#allocation5 + $0xb18] sm:$0xff]  ;;  %v1550_v24 = vpack.c.bf16 %v414_v18, %v410_v16  ;;  %v900_v10 = vld [vmem:[%s1991_s3] sm:$0xff]  ;;  %v919_v16 = vld [vmem:[%s1991_s3 + $0x98] sm:$0xff] }
  0xd1   :  { %v951_v18 = vld [vmem:[%s1991_s3 + $0x198] sm:$0xff] }
  0xd2   :  { %1339 = vmatpush1.bf16.msra.mxu0 %v1338_v27  ;;  %v420_v27 = vld [vmem:[#allocation5 + $0xb20] sm:$0xff]  ;;  %v959_v3 = vld [vmem:[%s1991_s3 + $0x1d8] sm:$0xff] }
  0xd3   :  { %1531 = vmatpush1.bf16.msra.mxu1 %v1530_v28  ;;  %1341 = vmatprep.subr.bf16.mxu0 %v1340_v29  ;;  %v418_v28 = vld [vmem:[#allocation5 + $0xb10] sm:$0xff]  ;;  %v1552_v29 = vpack.c.bf16 %v423_v22, %v419_v21  ;;  %v1362_v35 = vpack.c.bf16 %v420_v27, %v416_v26  ;;  %v1572_v22 = vpack.c.bf16 %v919_v16, %v918_v15  ;;  %v935_v27 = vld [vmem:[%s1991_s3 + $0x118] sm:$0xff]  ;;  %v961_v15 = vld [vmem:[%s1991_s3 + $0x1e8] sm:$0xff] }
  0xd4   :  { %1533 = vmatprep.subr.bf16.mxu1 %v1532_v33  ;;  %v427_v33 = vld [vmem:[#allocation5 + $0xb58] sm:$0xff]  ;;  %v1554_v36 = vpack.c.bf16 %v422_v30, %v418_v28  ;;  %v920_v28 = vld [vmem:[%s1991_s3 + $0xa0] sm:$0xff] }
  0xd5   :  { %v952_v30 = vld [vmem:[%s1991_s3 + $0x1a0] sm:$0xff] }
  0xd6   :  { %1343 = vmatpush1.bf16.msra.mxu0 %v1342_v39  ;;  %v428_v39 = vld [vmem:[#allocation5 + $0xb60] sm:$0xff] }
  0xd7   :  { %1535 = vmatpush1.bf16.msra.mxu1 %v1534_v40  ;;  %1345 = vmatprep.subr.bf16.mxu0 %v1344_v41  ;;  %v426_v40 = vld [vmem:[#allocation5 + $0xb50] sm:$0xff]  ;;  %v1556_v41 = vpack.c.bf16 %v431_v34, %v427_v33  ;;  %v1366_v47 = vpack.c.bf16 %v428_v39, %v424_v38  ;;  %v1608_v38 = vpack.c.bf16 %v953_v31, %v952_v30  ;;  %v937_v39 = vld [vmem:[%s1991_s3 + $0x128] sm:$0xff]  ;;  %v963_v30 = vld [vmem:[%s1991_s3 + $0x1f8] sm:$0xff] }
  0xd8   :  { %1537 = vmatprep.subr.bf16.mxu1 %v1536_v45  ;;  %v435_v45 = vld [vmem:[#allocation5 + $0xb98] sm:$0xff]  ;;  %v1558_v48 = vpack.c.bf16 %v430_v42, %v426_v40  ;;  %v922_v40 = vld [vmem:[%s1991_s3 + $0xb0] sm:$0xff] }
  0xd9   :  { %v954_v42 = vld [vmem:[%s1991_s3 + $0x1b0] sm:$0xff] }
  0xda   :  { %1347 = vmatpush1.bf16.msra.mxu0 %v1346_v51  ;;  %v436_v51 = vld [vmem:[#allocation5 + $0xba0] sm:$0xff] }
  0xdb   :  { %1539 = vmatpush1.bf16.msra.mxu1 %v1538_v52  ;;  %1349 = vmatprep.subr.bf16.mxu0 %v1348_v53  ;;  %v434_v52 = vld [vmem:[#allocation5 + $0xb90] sm:$0xff]  ;;  %v1560_v53 = vpack.c.bf16 %v439_v46, %v435_v45  ;;  %v1370_v59 = vpack.c.bf16 %v436_v51, %v432_v50  ;;  %v1612_v50 = vpack.c.bf16 %v955_v43, %v954_v42  ;;  %v939_v51 = vld [vmem:[%s1991_s3 + $0x138] sm:$0xff]  ;;  %v914_v31 = vld [vmem:[%s1991_s3 + $0x70] sm:$0xff] }
  0xdc   :  { %1541 = vmatprep.subr.bf16.mxu1 %v1540_v57  ;;  %v443_v57 = vld [vmem:[#allocation5 + $0xbd8] sm:$0xff]  ;;  %v1562_v60 = vpack.c.bf16 %v438_v54, %v434_v52  ;;  %v924_v52 = vld [vmem:[%s1991_s3 + $0xc0] sm:$0xff] }
  0xdd   :  { %v956_v54 = vld [vmem:[%s1991_s3 + $0x1c0] sm:$0xff] }
  0xde   :  { %1351 = vmatpush1.bf16.msra.mxu0 %v1350_v63  ;;  %v444_v63 = vld [vmem:[#allocation5 + $0xbe0] sm:$0xff] }
  0xdf   :  { %1543 = vmatpush1.bf16.msra.mxu1 %v1542_v0  ;;  %1353 = vmatprep.subr.bf16.mxu0 %v1352_v1  ;;  %v442_v0 = vld [vmem:[#allocation5 + $0xbd0] sm:$0xff]  ;;  %v1564_v1 = vpack.c.bf16 %v447_v58, %v443_v57  ;;  %v1374_v7 = vpack.c.bf16 %v444_v63, %v440_v62  ;;  %v1616_v62 = vpack.c.bf16 %v957_v55, %v956_v54  ;;  %v941_v63 = vld [vmem:[%s1991_s3 + $0x148] sm:$0xff] }
  0xe0   :  { %1545 = vmatprep.subr.bf16.mxu1 %v1544_v5  ;;  %v948_v5 = vld [vmem:[%s1991_s3 + $0x180] sm:$0xff]  ;;  %v1566_v8 = vpack.c.bf16 %v446_v2, %v442_v0  ;;  %v926_v0 = vld [vmem:[%s1991_s3 + $0xd0] sm:$0xff] }
  0xe1   :  { %v958_v2 = vld [vmem:[%s1991_s3 + $0x1d0] sm:$0xff] }
  0xe2   :  { %1355 = vmatpush1.bf16.msra.mxu0 %v1354_v11  ;;  %v901_v11 = vld [vmem:[%s1991_s3 + $0x8] sm:$0xff] }
  0xe3   :  { %1547 = vmatpush1.bf16.msra.mxu1 %v1546_v12  ;;  %1357 = vmatprep.subr.bf16.mxu0 %v1356_v13  ;;  %v932_v12 = vld [vmem:[%s1991_s3 + $0x100] sm:$0xff]  ;;  %v1600_v13 = vpack.c.bf16 %v949_v6, %v948_v5  ;;  %v1570_v20 = vpack.c.bf16 %v901_v11, %v900_v10  ;;  %v1620_v10 = vpack.c.bf16 %v959_v3, %v958_v2  ;;  %v943_v11 = vld [vmem:[%s1991_s3 + $0x158] sm:$0xff] }
  0xe4   :  { %1549 = vmatprep.subr.bf16.mxu1 %v1548_v17  ;;  %v950_v17 = vld [vmem:[%s1991_s3 + $0x190] sm:$0xff]  ;;  %v1602_v21 = vpack.c.bf16 %v933_v14, %v932_v12  ;;  %v928_v12 = vld [vmem:[%s1991_s3 + $0xe0] sm:$0xff] }
  0xe5   :  { %v1604_v26 = vpack.c.bf16 %v951_v18, %v950_v17  ;;  %v960_v14 = vld [vmem:[%s1991_s3 + $0x1e0] sm:$0xff] }
  0xe6   :  { %1359 = vmatpush1.bf16.msra.mxu0 %v1358_v23  ;;  %v902_v23 = vld [vmem:[%s1991_s3 + $0x10] sm:$0xff] }
  0xe7   :  { %1551 = vmatpush1.bf16.msra.mxu1 %v1550_v24  ;;  %1361 = vmatprep.subr.bf16.mxu0 %v1360_v25  ;;  %v903_v24 = vld [vmem:[%s1991_s3 + $0x18] sm:$0xff]  ;;  %v934_v25 = vld [vmem:[%s1991_s3 + $0x110] sm:$0xff] }
  0xe8   :  { %1553 = vmatprep.subr.bf16.mxu1 %v1552_v29  ;;  %v921_v29 = vld [vmem:[%s1991_s3 + $0xa8] sm:$0xff]  ;;  %v1574_v32 = vpack.c.bf16 %v903_v24, %v902_v23  ;;  %v1606_v33 = vpack.c.bf16 %v935_v27, %v934_v25  ;;  %v931_v27 = vld [vmem:[%s1991_s3 + $0xf8] sm:$0xff] }
  0xe9   :  { %v1576_v34 = vpack.c.bf16 %v921_v29, %v920_v28  ;;  %v945_v24 = vld [vmem:[%s1991_s3 + $0x168] sm:$0xff]  ;;  %v962_v28 = vld [vmem:[%s1991_s3 + $0x1f0] sm:$0xff] }
  0xea   :  { %1363 = vmatpush1.bf16.msra.mxu0 %v1362_v35  ;;  %v904_v35 = vld [vmem:[%s1991_s3 + $0x20] sm:$0xff] }
  0xeb   :  { %1555 = vmatpush1.bf16.msra.mxu1 %v1554_v36  ;;  %1365 = vmatprep.subr.bf16.mxu0 %v1364_v37  ;;  %v905_v36 = vld [vmem:[%s1991_s3 + $0x28] sm:$0xff]  ;;  %v936_v37 = vld [vmem:[%s1991_s3 + $0x120] sm:$0xff] }
  0xec   :  { %1557 = vmatprep.subr.bf16.mxu1 %v1556_v41  ;;  %v923_v41 = vld [vmem:[%s1991_s3 + $0xb8] sm:$0xff]  ;;  %v1578_v44 = vpack.c.bf16 %v905_v36, %v904_v35  ;;  %v1610_v45 = vpack.c.bf16 %v937_v39, %v936_v37  ;;  %v946_v35 = vld [vmem:[%s1991_s3 + $0x170] sm:$0xff] }
  0xed   :  { %v1580_v46 = vpack.c.bf16 %v923_v41, %v922_v40  ;;  %v947_v36 = vld [vmem:[%s1991_s3 + $0x178] sm:$0xff]  ;;  %v448_v41 = vld [vmem:[#allocation7] sm:$0xf] }
  0xee   :  { %1367 = vmatpush1.bf16.msra.mxu0 %v1366_v47  ;;  %v906_v47 = vld [vmem:[%s1991_s3 + $0x30] sm:$0xff]  ;;  %v1630_v37 = vpack.c.bf16 %v947_v36, %v946_v35 }
  0xef   :  { %1559 = vmatpush1.bf16.msra.mxu1 %v1558_v48  ;;  %1369 = vmatprep.subr.bf16.mxu0 %v1368_v49  ;;  %v907_v48 = vld [vmem:[%s1991_s3 + $0x38] sm:$0xff]  ;;  %v938_v49 = vld [vmem:[%s1991_s3 + $0x130] sm:$0xff] }
  0xf0   :  { %1561 = vmatprep.subr.bf16.mxu1 %v1560_v53  ;;  %v925_v53 = vld [vmem:[%s1991_s3 + $0xc8] sm:$0xff]  ;;  %v1582_v56 = vpack.c.bf16 %v907_v48, %v906_v47  ;;  %v1614_v57 = vpack.c.bf16 %v939_v51, %v938_v49 }
  0xf1   :  { %v1584_v58 = vpack.c.bf16 %v925_v53, %v924_v52 }
  0xf2   :  { %1371 = vmatpush1.bf16.msra.mxu0 %v1370_v59  ;;  %v908_v59 = vld [vmem:[%s1991_s3 + $0x40] sm:$0xff] }
  0xf3   :  { %1563 = vmatpush1.bf16.msra.mxu1 %v1562_v60  ;;  %1373 = vmatprep.subr.bf16.mxu0 %v1372_v61  ;;  %v909_v60 = vld [vmem:[%s1991_s3 + $0x48] sm:$0xff]  ;;  %v940_v61 = vld [vmem:[%s1991_s3 + $0x140] sm:$0xff] }
  0xf4   :  { %1565 = vmatprep.subr.bf16.mxu1 %v1564_v1  ;;  %v927_v1 = vld [vmem:[%s1991_s3 + $0xd8] sm:$0xff]  ;;  %v1586_v4 = vpack.c.bf16 %v909_v60, %v908_v59  ;;  %v1618_v5 = vpack.c.bf16 %v941_v63, %v940_v61  ;;  %v965_v63 = vstv %s1992_s4 }
  0xf5   :  { %v1588_v6 = vpack.c.bf16 %v927_v1, %v926_v0 }
  0xf6   :  { %1375 = vmatpush1.bf16.msra.mxu0 %v1374_v7  ;;  %v910_v7 = vld [vmem:[%s1991_s3 + $0x50] sm:$0xff] }
  0xf7   :  { %1567 = vmatpush1.bf16.msra.mxu1 %v1566_v8  ;;  %1569 = vmatprep.subr.bf16.mxu0 %v1568_v9  ;;  %v911_v8 = vld [vmem:[%s1991_s3 + $0x58] sm:$0xff]  ;;  %v942_v9 = vld [vmem:[%s1991_s3 + $0x150] sm:$0xff] }
  0xf8   :  { %1601 = vmatprep.subr.bf16.mxu1 %v1600_v13  ;;  %v929_v13 = vld [vmem:[%s1991_s3 + $0xe8] sm:$0xff]  ;;  %v1590_v16 = vpack.c.bf16 %v911_v8, %v910_v7  ;;  %v1622_v17 = vpack.c.bf16 %v943_v11, %v942_v9 }
  0xf9   :  { %677 = vmatmul.mubr.f32.vlgmr.msra.gmra.mrb[0].mxu0 %v62_v19  ;;  %v1592_v18 = vpack.c.bf16 %v929_v13, %v928_v12 }
  0xfa   :  { %890 = vmatmul.mubr.f32.vlgmr.msra.gmra.mrb[0].mxu1 %v62_v19  ;;  %1571 = vmatpush3.bf16.msra.mxu0 %v1570_v20  ;;  %v1624_v19 = vpack.c.bf16 %v961_v15, %v960_v14  ;;  %v912_v20 = vld [vmem:[%s1991_s3 + $0x60] sm:$0xff] }
  0xfb   :  { %1603 = vmatpush3.bf16.msra.mxu1 %v1602_v21  ;;  %1573 = vmatprep.subr.bf16.mxu0 %v1572_v22  ;;  %v913_v21 = vld [vmem:[%s1991_s3 + $0x68] sm:$0xff]  ;;  %v944_v22 = vld [vmem:[%s1991_s3 + $0x160] sm:$0xff] }
  0xfc   :  { %1605 = vmatprep.subr.bf16.mxu1 %v1604_v26  ;;  %v1594_v23 = vpack.c.bf16 %v913_v21, %v912_v20  ;;  %v1626_v25 = vpack.c.bf16 %v945_v24, %v944_v22  ;;  %v930_v26 = vld [vmem:[%s1991_s3 + $0xf0] sm:$0xff] }
  0xfd   :  { %v1596_v29 = vpack.c.bf16 %v931_v27, %v930_v26 }
  0xfe   :  { %1575 = vmatpush3.bf16.msra.mxu0 %v1574_v32  ;;  %v915_v32 = vld [vmem:[%s1991_s3 + $0x78] sm:$0xff] }
  0xff   :  { %1607 = vmatpush3.bf16.msra.mxu1 %v1606_v33  ;;  %1577 = vmatprep.subr.bf16.mxu0 %v1576_v34  ;;  %v1628_v33 = vpack.c.bf16 %v963_v30, %v962_v28  ;;  %v1598_v34 = vpack.c.bf16 %v915_v32, %v914_v31 }
 0x100   :  { %1609 = vmatprep.subr.bf16.mxu1 %v1608_v38  ;;  %v450_v38 = vlaneseq }
 0x102   :  { %1579 = vmatpush3.bf16.msra.mxu0 %v1578_v44  ;;  %v451_v39 = vshrl.u32 %v450_v38, 7 }
 0x103   :  { %1611 = vmatpush3.bf16.msra.mxu1 %v1610_v45  ;;  %1581 = vmatprep.subr.bf16.mxu0 %v1580_v46 }
 0x104   :  { %1613 = vmatprep.subr.bf16.mxu1 %v1612_v50  ;;  %v452_v40 = vsub.s32 0, %v451_v39  ;;  %v460_v42 = vsub.s32 2, %v451_v39  ;;  %v456_v43 = vsub.s32 1, %v451_v39  ;;  %v464_v44 = vsub.s32 3, %v451_v39 }
 0x106   :  { %1583 = vmatpush3.bf16.msra.mxu0 %v1582_v56  ;;  %v453_v45 = vrot.slane %v448_v41, %v452_v40  ;;  %v461_v46 = vrot.slane %v448_v41, %v460_v42  ;;  %v457_v47 = vrot.slane %v448_v41, %v456_v43  ;;  %v465_v48 = vrot.slane %v448_v41, %v464_v44 }
 0x107   :  { %1615 = vmatpush3.bf16.msra.mxu1 %v1614_v57  ;;  %1585 = vmatprep.subr.bf16.mxu0 %v1584_v58 }
 0x108   :  { %1617 = vmatprep.subr.bf16.mxu1 %v1616_v62 }
 0x10a   :  { %1587 = vmatpush3.bf16.msra.mxu0 %v1586_v4 }
 0x10b   :  { %1619 = vmatpush3.bf16.msra.mxu1 %v1618_v5  ;;  %1589 = vmatprep.subr.bf16.mxu0 %v1588_v6 }
 0x10c   :  { %1621 = vmatprep.subr.bf16.mxu1 %v1620_v10 }
 0x10e   :  { %1591 = vmatpush3.bf16.msra.mxu0 %v1590_v16 }
 0x10f   :  { %1623 = vmatpush3.bf16.msra.mxu1 %v1622_v17  ;;  %1593 = vmatprep.subr.bf16.mxu0 %v1592_v18 }
 0x110   :  { %1625 = vmatprep.subr.bf16.mxu1 %v1624_v19 }
 0x112   :  { %1595 = vmatpush3.bf16.msra.mxu0 %v1594_v23 }
 0x113   :  { %1627 = vmatpush3.bf16.msra.mxu1 %v1626_v25  ;;  %1597 = vmatprep.subr.bf16.mxu0 %v1596_v29 }
 0x114   :  { %1629 = vmatprep.subr.bf16.mxu1 %v1628_v33 }
 0x116   :  { %1599 = vmatpush3.bf16.msra.mxu0 %v1598_v34 }
 0x117   :  { %1631 = vmatpush3.bf16.msra.mxu1 %v1630_v37 }
 0x1cc   :  { %v678_v49 = vpop.f32.mrb[0].mxu0 }
 0x1cd   :  { %v1632_v50 = vadd.f32 %v678_v49, %v453_v45  ;;  %v891_v51 = vpop.f32.mrb[0].mxu1  ;;  %v680_v52 = vpop.f32.mrb[1].mxu0 }
 0x1ce   :  { %v1634_v53 = vadd.f32 %v891_v51, %v461_v46  ;;  %v1633_v54 = vadd.f32 %v680_v52, %v457_v47  ;;  %v893_v55 = vpop.f32.mrb[1].mxu1 }
 0x1cf   :  { %v1635_v56 = vadd.f32 %v893_v55, %v465_v48  ;;  %v896_v58 = vmax.f32 %v1632_v50, 0.0 }
 0x1d0   :  { %v897_v57 = vmax.f32 %v1633_v54, 0.0  ;;  %v898_v60 = vmax.f32 %v1634_v53, 0.0 }
 0x1d1   :  { %v899_v59 = vmax.f32 %v1635_v56, 0.0 }
 0x1d2   :  { %1030 = vmatprep.mubr.f32.mxu0 %v897_v57 }
 0x1d3   :  { %1100 = vmatprep.mubr.f32.mxu1 %v899_v59  ;;  %1031 = vmatmul.mubr.f32.vlgmr.msra.gmra.mrb[2].mxu0 %v896_v58 }
 0x1d4   :  { %1101 = vmatmul.mubr.f32.vlgmr.msra.gmra.mrb[2].mxu1 %v898_v60 }
 0x2a6   :  { %v1146_v61 = vpop.f32.mrb[2].mxu0 }
 0x2a7   :  { %v1181_v62 = vpop.f32.mrb[2].mxu1  ;;  %v1147_v0 = vpop.f32.mrb[3].mxu0 }
 0x2a8   :  { %v1148_v1 = vadd.f32 %v1147_v0, %v1146_v61  ;;  %v1182_v2 = vpop.f32.mrb[3].mxu1 }
 0x2a9   :  { %v1183_v3 = vadd.f32 %v1182_v2, %v1181_v62 }
 0x2aa   :  { %v1033_v4 = vadd.f32 %v1148_v1, %v965_v63 }
 0x2ac   :  { %v1103_v5 = vadd.f32 %v1183_v3, %v1033_v4 }
 0x2ae   :  { %1107 = vst.msk [vmem:[%s1993_s5] sm:$0xff] %vm1106_vm0, %v1103_v5 }
 0x2af   :  { %1112 = vsyncpa [#allocation4], 1 }
 0x2b0   :  { %1113 = vsyncpa [#allocation6], 1 }

</bundles_post_ra>
